<compile_context>
chip_gen: v7x
topology: tpu7x:2x2x1
jax: 0.10.0
libtpu: 0.0.40
codegen_flags: <defaults>
</compile_context>

<pallas_src>
import math

import jax
import jax.numpy as jnp
from jax.experimental import pallas as pl
from jax.experimental.pallas import tpu as pltpu


# --------------------------------------------------------------------------
# Fused kernel factory: whole forward pass (all LSTM layers + FC head).
# --------------------------------------------------------------------------
def make_fused_kernel(T, B, hidden_size, num_layers, fc_acts):
    H = hidden_size
    n_lstm = 3 * num_layers
    n_fc = 2 * len(fc_acts)

    def kernel(*refs):
        x_ref = refs[0]                                   # (T*B, Din) bf16
        lstm_refs = refs[1:1 + n_lstm]
        fc_refs = refs[1 + n_lstm:1 + n_lstm + n_fc]
        out_ref = refs[1 + n_lstm + n_fc]                 # (B, 1) f32

        layer_in = x_ref[...]                             # bf16 value
        h = None
        for layer in range(num_layers):
            w_ih = lstm_refs[3 * layer][...]              # (Din, 4H) bf16, gates i,f,o,g
            w_hh = lstm_refs[3 * layer + 1][...]          # (H,   4H) bf16, gates i,f,o,g
            b = lstm_refs[3 * layer + 2][...]             # (1,   4H) f32   (b_ih + b_hh)

            # Hoisted input projection + folded bias: ONE (T*B, Din) x (Din, 4H) MXU
            # matmul for all timesteps, kept as a VALUE (vregs) — no scratch traffic.
            gates_x = jnp.dot(layer_in, w_ih,
                              preferred_element_type=jnp.float32) + b

            h = jnp.zeros((B, H), jnp.float32)
            c = jnp.zeros((B, H), jnp.float32)
            last_layer = layer == num_layers - 1
            hs = []

            for t in range(T):                            # static unroll; h/c stay in vregs
                # Single fused recurrent matmul: (B,H) x (H,4H=128 lanes).
                g = gates_x[t * B:(t + 1) * B, :] + jnp.dot(
                    h.astype(jnp.bfloat16), w_hh,
                    preferred_element_type=jnp.float32)
                # Gate order (i, f, o, g): sigmoid gates are lane-contiguous ->
                # one sigmoid over 3H lanes + one tanh over H lanes per step.
                s = jax.nn.sigmoid(g[:, :3 * H])
                tg = jnp.tanh(g[:, 3 * H:])
                gi = s[:, 0 * H:1 * H]
                gf = s[:, 1 * H:2 * H]
                go = s[:, 2 * H:3 * H]
                c = gf * c + gi * tg
                h = go * jnp.tanh(c)
                if not last_layer:
                    hs.append(h.astype(jnp.bfloat16))     # cast off the chain

            if not last_layer:
                # One concatenate at the layer boundary; off the critical path.
                layer_in = jnp.concatenate(hs, axis=0)    # (T*B, H) bf16

        # FC head on h_out[-1] (B, H); bf16 x bf16 -> f32 matmuls.
        y = h
        for j, act in enumerate(fc_acts):
            w = fc_refs[2 * j][...]                       # (fin, fout) bf16
            fb = fc_refs[2 * j + 1][...]                  # (1, fout)   f32
            y = jnp.dot(y.astype(jnp.bfloat16), w,
                        preferred_element_type=jnp.float32) + fb
            if act:
                y = jax.nn.sigmoid(y)
        out_ref[...] = y.astype(out_ref.dtype)

    return kernel


# --------------------------------------------------------------------------
# Parameter construction (deterministic, synthetic) + gate re-packing.
# --------------------------------------------------------------------------
def _pack_gates_w(w_pt, H):
    """(4H, d) PyTorch layout, gate order (i,f,g,o)  ->  (d, 4H), order (i,f,o,g)."""
    wi, wf, wg, wo = w_pt[:H], w_pt[H:2 * H], w_pt[2 * H:3 * H], w_pt[3 * H:]
    return jnp.concatenate([wi, wf, wo, wg], axis=0).T


def _pack_gates_b(b_pt, H):
    """(4H,) PyTorch order (i,f,g,o) -> (1, 4H) order (i,f,o,g)."""
    bi, bf, bg, bo = b_pt[:H], b_pt[H:2 * H], b_pt[2 * H:3 * H], b_pt[3 * H:]
    return jnp.concatenate([bi, bf, bo, bg], axis=0).reshape(1, 4 * H)


def build_params(key, input_size, hidden_size, num_layers, num_fc_layers,
                 activation_type):
    params = {"lstm": [], "fc": []}
    H = hidden_size
    k = 1.0 / math.sqrt(H)

    for layer in range(num_layers):
        d_in = input_size if layer == 0 else H
        key, k1, k2, k3, k4 = jax.random.split(key, 5)
        # Generated in PyTorch layout (4H, d_in)/(4H, H), order (i,f,g,o),
        # then permuted to the kernel's packed (i,f,o,g) lane layout.
        w_ih_pt = jax.random.uniform(k1, (4 * H, d_in), jnp.float32, -k, k)
        w_hh_pt = jax.random.uniform(k2, (4 * H, H), jnp.float32, -k, k)
        b_ih = jax.random.uniform(k3, (4 * H,), jnp.float32, -k, k)
        b_hh = jax.random.uniform(k4, (4 * H,), jnp.float32, -k, k)

        w_ih = _pack_gates_w(w_ih_pt, H).astype(jnp.bfloat16)      # (d_in, 4H)
        w_hh = _pack_gates_w(w_hh_pt, H).astype(jnp.bfloat16)      # (H,    4H)
        b = _pack_gates_b(b_ih + b_hh, H)                          # (1,    4H) f32
        params["lstm"].append((w_ih, w_hh, b))

    # Replicate the FC-stack construction logic of the PyTorch module.
    fc_shapes = []
    in_features = H
    for _ in range(1, num_fc_layers):
        out_features = int(in_features / 2)
        if out_features <= 1:
            break
        # Activation only actually appended when activation_type == 2 (then Sigmoid).
        fc_shapes.append((in_features, out_features, activation_type == 2))
        in_features = out_features
    fc_shapes.append((in_features, 1, False))

    initrange = 0.5
    for (fin, fout, act) in fc_shapes:
        key, kw = jax.random.split(key)
        w = jax.random.uniform(kw, (fin, fout), jnp.float32,
                               -initrange, initrange).astype(jnp.bfloat16)
        b = jnp.zeros((1, fout), jnp.float32)
        params["fc"].append((w, b, act))

    return params


# --------------------------------------------------------------------------
# Full forward pass (mirrors StockPricePredictionLSTM.forward) — ONE pallas_call.
# --------------------------------------------------------------------------
def forward(x, params, hidden_size):
    """x: (B, T, input_size) batch-first, like the PyTorch module."""
    B, T, Din = x.shape
    num_layers = len(params["lstm"])
    fc_acts = tuple(act for (_, _, act) in params["fc"])

    # Time-major, flattened to (T*B, Din) rows ordered (t, b); bf16 matmul operand.
    x_flat = (jnp.transpose(x, (1, 0, 2))
              .reshape(T * B, Din)
              .astype(jnp.bfloat16))

    args = [x_flat]
    for (w_ih, w_hh, b) in params["lstm"]:
        args += [w_ih, w_hh, b]
    for (w, b, _) in params["fc"]:
        args += [w, b]

    kernel = make_fused_kernel(T, B, hidden_size, num_layers, fc_acts)
    return pl.pallas_call(
        kernel,
        out_shape=jax.ShapeDtypeStruct((B, 1), jnp.float32),
        in_specs=[pl.BlockSpec(memory_space=pltpu.MemorySpace.VMEM)] * len(args),
        out_specs=pl.BlockSpec(memory_space=pltpu.MemorySpace.VMEM),
    )(*args)


# --------------------------------------------------------------------------
# Pure-JAX reference (same packed bf16 params) for a tolerance check.
# --------------------------------------------------------------------------
def forward_ref(x, params, hidden_size):
    B, T, Din = x.shape
    H = hidden_size
    layer_in = jnp.transpose(x, (1, 0, 2)).astype(jnp.bfloat16)     # (T, B, Din)
    h = None
    for li, (w_ih, w_hh, b) in enumerate(params["lstm"]):
        gx = jnp.einsum("tbd,dk->tbk", layer_in.astype(jnp.float32),
                        w_ih.astype(jnp.float32)) + b[0]
        h = jnp.zeros((B, H), jnp.float32)
        c = jnp.zeros((B, H), jnp.float32)
        outs = []
        for t in range(T):
            g = gx[t] + h @ w_hh.astype(jnp.float32)
            gi = jax.nn.sigmoid(g[:, 0 * H:1 * H])
            gf = jax.nn.sigmoid(g[:, 1 * H:2 * H])
            go = jax.nn.sigmoid(g[:, 2 * H:3 * H])
            tg = jnp.tanh(g[:, 3 * H:4 * H])
            c = gf * c + gi * tg
            h = go * jnp.tanh(c)
            outs.append(h)
        layer_in = jnp.stack(outs, axis=0).astype(jnp.bfloat16)
    y = h
    for (w, b, act) in params["fc"]:
        y = y @ w.astype(jnp.float32) + b
        if act:
            y = jax.nn.sigmoid(y)
    return y


if __name__ == "__main__":
    seq_len = 8
    input_size = 4
    hidden_size = 32
    num_layers = 2
    num_fc_layers = 3
    activation_type = 2
    batch = 2

    key = jax.random.PRNGKey(0)
    key, kx, kp = jax.random.split(key, 3)

    params = build_params(kp, input_size, hidden_size, num_layers,
                          num_fc_layers, activation_type)
    x = jax.random.normal(kx, (batch, seq_len, input_size), jnp.float32)

    out = forward(x, params, hidden_size)
    out = jax.block_until_ready(out)

    ref = jax.block_until_ready(forward_ref(x, params, hidden_size))

    assert out.shape == (batch, 1), out.shape
    assert jnp.all(jnp.isfinite(out))
    # bf16 MXU operands -> allow a generous tolerance versus the f32 reference.
    assert jnp.allclose(out, ref, atol=5e-2, rtol=5e-2), (out, ref)
    print("KERNEL_OK")
</pallas_src>

<mosaic_0001>
module attributes {stable_mosaic.version = 11 : i64} {
  func.func @kernel(%arg0: memref<16x4xbf16, #tpu.memory_space<vmem>>, %arg1: memref<4x128xbf16, #tpu.memory_space<vmem>>, %arg2: memref<32x128xbf16, #tpu.memory_space<vmem>>, %arg3: memref<1x128xf32, #tpu.memory_space<vmem>>, %arg4: memref<32x128xbf16, #tpu.memory_space<vmem>>, %arg5: memref<32x128xbf16, #tpu.memory_space<vmem>>, %arg6: memref<1x128xf32, #tpu.memory_space<vmem>>, %arg7: memref<32x16xbf16, #tpu.memory_space<vmem>>, %arg8: memref<1x16xf32, #tpu.memory_space<vmem>>, %arg9: memref<16x8xbf16, #tpu.memory_space<vmem>>, %arg10: memref<1x8xf32, #tpu.memory_space<vmem>>, %arg11: memref<8x1xbf16, #tpu.memory_space<vmem>>, %arg12: memref<1x1xf32, #tpu.memory_space<vmem>>, %arg13: memref<2x1xf32, #tpu.memory_space<vmem>>) attributes {dimension_semantics = [], scalar_prefetch = 0 : i64, scratch_operands = 0 : i64, tpu.core_type = #tpu.core_type<tc>} {
    %c0 = arith.constant 0 : index
    %c0_0 = arith.constant 0 : index
    %0 = vector.load %arg0[%c0, %c0_0] : memref<16x4xbf16, #tpu.memory_space<vmem>>, vector<16x4xbf16>
    %c0_1 = arith.constant 0 : index
    %c0_2 = arith.constant 0 : index
    %1 = vector.load %arg1[%c0_1, %c0_2] : memref<4x128xbf16, #tpu.memory_space<vmem>>, vector<4x128xbf16>
    %c0_3 = arith.constant 0 : index
    %c0_4 = arith.constant 0 : index
    %2 = vector.load %arg2[%c0_3, %c0_4] : memref<32x128xbf16, #tpu.memory_space<vmem>>, vector<32x128xbf16>
    %c0_5 = arith.constant 0 : index
    %c0_6 = arith.constant 0 : index
    %3 = vector.load %arg3[%c0_5, %c0_6] : memref<1x128xf32, #tpu.memory_space<vmem>>, vector<1x128xf32>
    %cst = arith.constant dense<0.000000e+00> : vector<16x128xf32>
    %4 = tpu.matmul %0, %1, %cst {dimension_numbers = #tpu.dot_dimension_numbers<[1], [0], [0], [1], [0, 0, 1, 1], [], []>} : vector<16x4xbf16>, vector<4x128xbf16>, vector<16x128xf32> -> vector<16x128xf32>
    %5 = vector.broadcast %3 : vector<1x128xf32> to vector<16x128xf32>
    %6 = arith.addf %4, %5 : vector<16x128xf32>
    %cst_7 = arith.constant 0.000000e+00 : f32
    %7 = vector.broadcast %cst_7 : f32 to vector<2x32xf32>
    %cst_8 = arith.constant 0.000000e+00 : f32
    %8 = vector.broadcast %cst_8 : f32 to vector<2x32xf32>
    %9 = vector.extract_strided_slice %6 {offsets = [0, 0], sizes = [2, 128], strides = [1, 1]} : vector<16x128xf32> to vector<2x128xf32>
    %10 = arith.truncf %7 : vector<2x32xf32> to vector<2x32xbf16>
    %cst_9 = arith.constant dense<0.000000e+00> : vector<2x128xf32>
    %11 = tpu.matmul %10, %2, %cst_9 {dimension_numbers = #tpu.dot_dimension_numbers<[1], [0], [0], [1], [0, 0, 1, 1], [], []>} : vector<2x32xbf16>, vector<32x128xbf16>, vector<2x128xf32> -> vector<2x128xf32>
    %12 = arith.addf %9, %11 : vector<2x128xf32>
    %13 = vector.extract_strided_slice %12 {offsets = [0, 0], sizes = [2, 96], strides = [1, 1]} : vector<2x128xf32> to vector<2x96xf32>
    %14 = arith.negf %13 : vector<2x96xf32>
    %15 = math.exp %14 : vector<2x96xf32>
    %cst_10 = arith.constant 1.000000e+00 : f32
    %16 = vector.broadcast %cst_10 : f32 to vector<2x96xf32>
    %17 = arith.addf %16, %15 : vector<2x96xf32>
    %18 = arith.divf %16, %17 : vector<2x96xf32>
    %19 = vector.extract_strided_slice %12 {offsets = [0, 96], sizes = [2, 32], strides = [1, 1]} : vector<2x128xf32> to vector<2x32xf32>
    %20 = math.tanh %19 : vector<2x32xf32>
    %21 = vector.extract_strided_slice %18 {offsets = [0, 0], sizes = [2, 32], strides = [1, 1]} : vector<2x96xf32> to vector<2x32xf32>
    %22 = vector.extract_strided_slice %18 {offsets = [0, 32], sizes = [2, 32], strides = [1, 1]} : vector<2x96xf32> to vector<2x32xf32>
    %23 = vector.extract_strided_slice %18 {offsets = [0, 64], sizes = [2, 32], strides = [1, 1]} : vector<2x96xf32> to vector<2x32xf32>
    %24 = arith.mulf %22, %8 : vector<2x32xf32>
    %25 = arith.mulf %21, %20 : vector<2x32xf32>
    %26 = arith.addf %24, %25 : vector<2x32xf32>
    %27 = math.tanh %26 : vector<2x32xf32>
    %28 = arith.mulf %23, %27 : vector<2x32xf32>
    %29 = arith.truncf %28 : vector<2x32xf32> to vector<2x32xbf16>
    %30 = vector.extract_strided_slice %6 {offsets = [2, 0], sizes = [2, 128], strides = [1, 1]} : vector<16x128xf32> to vector<2x128xf32>
    %31 = arith.truncf %28 : vector<2x32xf32> to vector<2x32xbf16>
    %cst_11 = arith.constant dense<0.000000e+00> : vector<2x128xf32>
    %32 = tpu.matmul %31, %2, %cst_11 {dimension_numbers = #tpu.dot_dimension_numbers<[1], [0], [0], [1], [0, 0, 1, 1], [], []>} : vector<2x32xbf16>, vector<32x128xbf16>, vector<2x128xf32> -> vector<2x128xf32>
    %33 = arith.addf %30, %32 : vector<2x128xf32>
    %34 = vector.extract_strided_slice %33 {offsets = [0, 0], sizes = [2, 96], strides = [1, 1]} : vector<2x128xf32> to vector<2x96xf32>
    %35 = arith.negf %34 : vector<2x96xf32>
    %36 = math.exp %35 : vector<2x96xf32>
    %cst_12 = arith.constant 1.000000e+00 : f32
    %37 = vector.broadcast %cst_12 : f32 to vector<2x96xf32>
    %38 = arith.addf %37, %36 : vector<2x96xf32>
    %39 = arith.divf %37, %38 : vector<2x96xf32>
    %40 = vector.extract_strided_slice %33 {offsets = [0, 96], sizes = [2, 32], strides = [1, 1]} : vector<2x128xf32> to vector<2x32xf32>
    %41 = math.tanh %40 : vector<2x32xf32>
    %42 = vector.extract_strided_slice %39 {offsets = [0, 0], sizes = [2, 32], strides = [1, 1]} : vector<2x96xf32> to vector<2x32xf32>
    %43 = vector.extract_strided_slice %39 {offsets = [0, 32], sizes = [2, 32], strides = [1, 1]} : vector<2x96xf32> to vector<2x32xf32>
    %44 = vector.extract_strided_slice %39 {offsets = [0, 64], sizes = [2, 32], strides = [1, 1]} : vector<2x96xf32> to vector<2x32xf32>
    %45 = arith.mulf %43, %26 : vector<2x32xf32>
    %46 = arith.mulf %42, %41 : vector<2x32xf32>
    %47 = arith.addf %45, %46 : vector<2x32xf32>
    %48 = math.tanh %47 : vector<2x32xf32>
    %49 = arith.mulf %44, %48 : vector<2x32xf32>
    %50 = arith.truncf %49 : vector<2x32xf32> to vector<2x32xbf16>
    %51 = vector.extract_strided_slice %6 {offsets = [4, 0], sizes = [2, 128], strides = [1, 1]} : vector<16x128xf32> to vector<2x128xf32>
    %52 = arith.truncf %49 : vector<2x32xf32> to vector<2x32xbf16>
    %cst_13 = arith.constant dense<0.000000e+00> : vector<2x128xf32>
    %53 = tpu.matmul %52, %2, %cst_13 {dimension_numbers = #tpu.dot_dimension_numbers<[1], [0], [0], [1], [0, 0, 1, 1], [], []>} : vector<2x32xbf16>, vector<32x128xbf16>, vector<2x128xf32> -> vector<2x128xf32>
    %54 = arith.addf %51, %53 : vector<2x128xf32>
    %55 = vector.extract_strided_slice %54 {offsets = [0, 0], sizes = [2, 96], strides = [1, 1]} : vector<2x128xf32> to vector<2x96xf32>
    %56 = arith.negf %55 : vector<2x96xf32>
    %57 = math.exp %56 : vector<2x96xf32>
    %cst_14 = arith.constant 1.000000e+00 : f32
    %58 = vector.broadcast %cst_14 : f32 to vector<2x96xf32>
    %59 = arith.addf %58, %57 : vector<2x96xf32>
    %60 = arith.divf %58, %59 : vector<2x96xf32>
    %61 = vector.extract_strided_slice %54 {offsets = [0, 96], sizes = [2, 32], strides = [1, 1]} : vector<2x128xf32> to vector<2x32xf32>
    %62 = math.tanh %61 : vector<2x32xf32>
    %63 = vector.extract_strided_slice %60 {offsets = [0, 0], sizes = [2, 32], strides = [1, 1]} : vector<2x96xf32> to vector<2x32xf32>
    %64 = vector.extract_strided_slice %60 {offsets = [0, 32], sizes = [2, 32], strides = [1, 1]} : vector<2x96xf32> to vector<2x32xf32>
    %65 = vector.extract_strided_slice %60 {offsets = [0, 64], sizes = [2, 32], strides = [1, 1]} : vector<2x96xf32> to vector<2x32xf32>
    %66 = arith.mulf %64, %47 : vector<2x32xf32>
    %67 = arith.mulf %63, %62 : vector<2x32xf32>
    %68 = arith.addf %66, %67 : vector<2x32xf32>
    %69 = math.tanh %68 : vector<2x32xf32>
    %70 = arith.mulf %65, %69 : vector<2x32xf32>
    %71 = arith.truncf %70 : vector<2x32xf32> to vector<2x32xbf16>
    %72 = vector.extract_strided_slice %6 {offsets = [6, 0], sizes = [2, 128], strides = [1, 1]} : vector<16x128xf32> to vector<2x128xf32>
    %73 = arith.truncf %70 : vector<2x32xf32> to vector<2x32xbf16>
    %cst_15 = arith.constant dense<0.000000e+00> : vector<2x128xf32>
    %74 = tpu.matmul %73, %2, %cst_15 {dimension_numbers = #tpu.dot_dimension_numbers<[1], [0], [0], [1], [0, 0, 1, 1], [], []>} : vector<2x32xbf16>, vector<32x128xbf16>, vector<2x128xf32> -> vector<2x128xf32>
    %75 = arith.addf %72, %74 : vector<2x128xf32>
    %76 = vector.extract_strided_slice %75 {offsets = [0, 0], sizes = [2, 96], strides = [1, 1]} : vector<2x128xf32> to vector<2x96xf32>
    %77 = arith.negf %76 : vector<2x96xf32>
    %78 = math.exp %77 : vector<2x96xf32>
    %cst_16 = arith.constant 1.000000e+00 : f32
    %79 = vector.broadcast %cst_16 : f32 to vector<2x96xf32>
    %80 = arith.addf %79, %78 : vector<2x96xf32>
    %81 = arith.divf %79, %80 : vector<2x96xf32>
    %82 = vector.extract_strided_slice %75 {offsets = [0, 96], sizes = [2, 32], strides = [1, 1]} : vector<2x128xf32> to vector<2x32xf32>
    %83 = math.tanh %82 : vector<2x32xf32>
    %84 = vector.extract_strided_slice %81 {offsets = [0, 0], sizes = [2, 32], strides = [1, 1]} : vector<2x96xf32> to vector<2x32xf32>
    %85 = vector.extract_strided_slice %81 {offsets = [0, 32], sizes = [2, 32], strides = [1, 1]} : vector<2x96xf32> to vector<2x32xf32>
    %86 = vector.extract_strided_slice %81 {offsets = [0, 64], sizes = [2, 32], strides = [1, 1]} : vector<2x96xf32> to vector<2x32xf32>
    %87 = arith.mulf %85, %68 : vector<2x32xf32>
    %88 = arith.mulf %84, %83 : vector<2x32xf32>
    %89 = arith.addf %87, %88 : vector<2x32xf32>
    %90 = math.tanh %89 : vector<2x32xf32>
    %91 = arith.mulf %86, %90 : vector<2x32xf32>
    %92 = arith.truncf %91 : vector<2x32xf32> to vector<2x32xbf16>
    %93 = vector.extract_strided_slice %6 {offsets = [8, 0], sizes = [2, 128], strides = [1, 1]} : vector<16x128xf32> to vector<2x128xf32>
    %94 = arith.truncf %91 : vector<2x32xf32> to vector<2x32xbf16>
    %cst_17 = arith.constant dense<0.000000e+00> : vector<2x128xf32>
    %95 = tpu.matmul %94, %2, %cst_17 {dimension_numbers = #tpu.dot_dimension_numbers<[1], [0], [0], [1], [0, 0, 1, 1], [], []>} : vector<2x32xbf16>, vector<32x128xbf16>, vector<2x128xf32> -> vector<2x128xf32>
    %96 = arith.addf %93, %95 : vector<2x128xf32>
    %97 = vector.extract_strided_slice %96 {offsets = [0, 0], sizes = [2, 96], strides = [1, 1]} : vector<2x128xf32> to vector<2x96xf32>
    %98 = arith.negf %97 : vector<2x96xf32>
    %99 = math.exp %98 : vector<2x96xf32>
    %cst_18 = arith.constant 1.000000e+00 : f32
    %100 = vector.broadcast %cst_18 : f32 to vector<2x96xf32>
    %101 = arith.addf %100, %99 : vector<2x96xf32>
    %102 = arith.divf %100, %101 : vector<2x96xf32>
    %103 = vector.extract_strided_slice %96 {offsets = [0, 96], sizes = [2, 32], strides = [1, 1]} : vector<2x128xf32> to vector<2x32xf32>
    %104 = math.tanh %103 : vector<2x32xf32>
    %105 = vector.extract_strided_slice %102 {offsets = [0, 0], sizes = [2, 32], strides = [1, 1]} : vector<2x96xf32> to vector<2x32xf32>
    %106 = vector.extract_strided_slice %102 {offsets = [0, 32], sizes = [2, 32], strides = [1, 1]} : vector<2x96xf32> to vector<2x32xf32>
    %107 = vector.extract_strided_slice %102 {offsets = [0, 64], sizes = [2, 32], strides = [1, 1]} : vector<2x96xf32> to vector<2x32xf32>
    %108 = arith.mulf %106, %89 : vector<2x32xf32>
    %109 = arith.mulf %105, %104 : vector<2x32xf32>
    %110 = arith.addf %108, %109 : vector<2x32xf32>
    %111 = math.tanh %110 : vector<2x32xf32>
    %112 = arith.mulf %107, %111 : vector<2x32xf32>
    %113 = arith.truncf %112 : vector<2x32xf32> to vector<2x32xbf16>
    %114 = vector.extract_strided_slice %6 {offsets = [10, 0], sizes = [2, 128], strides = [1, 1]} : vector<16x128xf32> to vector<2x128xf32>
    %115 = arith.truncf %112 : vector<2x32xf32> to vector<2x32xbf16>
    %cst_19 = arith.constant dense<0.000000e+00> : vector<2x128xf32>
    %116 = tpu.matmul %115, %2, %cst_19 {dimension_numbers = #tpu.dot_dimension_numbers<[1], [0], [0], [1], [0, 0, 1, 1], [], []>} : vector<2x32xbf16>, vector<32x128xbf16>, vector<2x128xf32> -> vector<2x128xf32>
    %117 = arith.addf %114, %116 : vector<2x128xf32>
    %118 = vector.extract_strided_slice %117 {offsets = [0, 0], sizes = [2, 96], strides = [1, 1]} : vector<2x128xf32> to vector<2x96xf32>
    %119 = arith.negf %118 : vector<2x96xf32>
    %120 = math.exp %119 : vector<2x96xf32>
    %cst_20 = arith.constant 1.000000e+00 : f32
    %121 = vector.broadcast %cst_20 : f32 to vector<2x96xf32>
    %122 = arith.addf %121, %120 : vector<2x96xf32>
    %123 = arith.divf %121, %122 : vector<2x96xf32>
    %124 = vector.extract_strided_slice %117 {offsets = [0, 96], sizes = [2, 32], strides = [1, 1]} : vector<2x128xf32> to vector<2x32xf32>
    %125 = math.tanh %124 : vector<2x32xf32>
    %126 = vector.extract_strided_slice %123 {offsets = [0, 0], sizes = [2, 32], strides = [1, 1]} : vector<2x96xf32> to vector<2x32xf32>
    %127 = vector.extract_strided_slice %123 {offsets = [0, 32], sizes = [2, 32], strides = [1, 1]} : vector<2x96xf32> to vector<2x32xf32>
    %128 = vector.extract_strided_slice %123 {offsets = [0, 64], sizes = [2, 32], strides = [1, 1]} : vector<2x96xf32> to vector<2x32xf32>
    %129 = arith.mulf %127, %110 : vector<2x32xf32>
    %130 = arith.mulf %126, %125 : vector<2x32xf32>
    %131 = arith.addf %129, %130 : vector<2x32xf32>
    %132 = math.tanh %131 : vector<2x32xf32>
    %133 = arith.mulf %128, %132 : vector<2x32xf32>
    %134 = arith.truncf %133 : vector<2x32xf32> to vector<2x32xbf16>
    %135 = vector.extract_strided_slice %6 {offsets = [12, 0], sizes = [2, 128], strides = [1, 1]} : vector<16x128xf32> to vector<2x128xf32>
    %136 = arith.truncf %133 : vector<2x32xf32> to vector<2x32xbf16>
    %cst_21 = arith.constant dense<0.000000e+00> : vector<2x128xf32>
    %137 = tpu.matmul %136, %2, %cst_21 {dimension_numbers = #tpu.dot_dimension_numbers<[1], [0], [0], [1], [0, 0, 1, 1], [], []>} : vector<2x32xbf16>, vector<32x128xbf16>, vector<2x128xf32> -> vector<2x128xf32>
    %138 = arith.addf %135, %137 : vector<2x128xf32>
    %139 = vector.extract_strided_slice %138 {offsets = [0, 0], sizes = [2, 96], strides = [1, 1]} : vector<2x128xf32> to vector<2x96xf32>
    %140 = arith.negf %139 : vector<2x96xf32>
    %141 = math.exp %140 : vector<2x96xf32>
    %cst_22 = arith.constant 1.000000e+00 : f32
    %142 = vector.broadcast %cst_22 : f32 to vector<2x96xf32>
    %143 = arith.addf %142, %141 : vector<2x96xf32>
    %144 = arith.divf %142, %143 : vector<2x96xf32>
    %145 = vector.extract_strided_slice %138 {offsets = [0, 96], sizes = [2, 32], strides = [1, 1]} : vector<2x128xf32> to vector<2x32xf32>
    %146 = math.tanh %145 : vector<2x32xf32>
    %147 = vector.extract_strided_slice %144 {offsets = [0, 0], sizes = [2, 32], strides = [1, 1]} : vector<2x96xf32> to vector<2x32xf32>
    %148 = vector.extract_strided_slice %144 {offsets = [0, 32], sizes = [2, 32], strides = [1, 1]} : vector<2x96xf32> to vector<2x32xf32>
    %149 = vector.extract_strided_slice %144 {offsets = [0, 64], sizes = [2, 32], strides = [1, 1]} : vector<2x96xf32> to vector<2x32xf32>
    %150 = arith.mulf %148, %131 : vector<2x32xf32>
    %151 = arith.mulf %147, %146 : vector<2x32xf32>
    %152 = arith.addf %150, %151 : vector<2x32xf32>
    %153 = math.tanh %152 : vector<2x32xf32>
    %154 = arith.mulf %149, %153 : vector<2x32xf32>
    %155 = arith.truncf %154 : vector<2x32xf32> to vector<2x32xbf16>
    %156 = vector.extract_strided_slice %6 {offsets = [14, 0], sizes = [2, 128], strides = [1, 1]} : vector<16x128xf32> to vector<2x128xf32>
    %157 = arith.truncf %154 : vector<2x32xf32> to vector<2x32xbf16>
    %cst_23 = arith.constant dense<0.000000e+00> : vector<2x128xf32>
    %158 = tpu.matmul %157, %2, %cst_23 {dimension_numbers = #tpu.dot_dimension_numbers<[1], [0], [0], [1], [0, 0, 1, 1], [], []>} : vector<2x32xbf16>, vector<32x128xbf16>, vector<2x128xf32> -> vector<2x128xf32>
    %159 = arith.addf %156, %158 : vector<2x128xf32>
    %160 = vector.extract_strided_slice %159 {offsets = [0, 0], sizes = [2, 96], strides = [1, 1]} : vector<2x128xf32> to vector<2x96xf32>
    %161 = arith.negf %160 : vector<2x96xf32>
    %162 = math.exp %161 : vector<2x96xf32>
    %cst_24 = arith.constant 1.000000e+00 : f32
    %163 = vector.broadcast %cst_24 : f32 to vector<2x96xf32>
    %164 = arith.addf %163, %162 : vector<2x96xf32>
    %165 = arith.divf %163, %164 : vector<2x96xf32>
    %166 = vector.extract_strided_slice %159 {offsets = [0, 96], sizes = [2, 32], strides = [1, 1]} : vector<2x128xf32> to vector<2x32xf32>
    %167 = math.tanh %166 : vector<2x32xf32>
    %168 = vector.extract_strided_slice %165 {offsets = [0, 0], sizes = [2, 32], strides = [1, 1]} : vector<2x96xf32> to vector<2x32xf32>
    %169 = vector.extract_strided_slice %165 {offsets = [0, 32], sizes = [2, 32], strides = [1, 1]} : vector<2x96xf32> to vector<2x32xf32>
    %170 = vector.extract_strided_slice %165 {offsets = [0, 64], sizes = [2, 32], strides = [1, 1]} : vector<2x96xf32> to vector<2x32xf32>
    %171 = arith.mulf %169, %152 : vector<2x32xf32>
    %172 = arith.mulf %168, %167 : vector<2x32xf32>
    %173 = arith.addf %171, %172 : vector<2x32xf32>
    %174 = math.tanh %173 : vector<2x32xf32>
    %175 = arith.mulf %170, %174 : vector<2x32xf32>
    %176 = arith.truncf %175 : vector<2x32xf32> to vector<2x32xbf16>
    %177 = tpu.concatenate %29, %50, %71, %92, %113, %134, %155, %176 in 0 : vector<2x32xbf16>, vector<2x32xbf16>, vector<2x32xbf16>, vector<2x32xbf16>, vector<2x32xbf16>, vector<2x32xbf16>, vector<2x32xbf16>, vector<2x32xbf16> -> vector<16x32xbf16>
    %c0_25 = arith.constant 0 : index
    %c0_26 = arith.constant 0 : index
    %178 = vector.load %arg4[%c0_25, %c0_26] : memref<32x128xbf16, #tpu.memory_space<vmem>>, vector<32x128xbf16>
    %c0_27 = arith.constant 0 : index
    %c0_28 = arith.constant 0 : index
    %179 = vector.load %arg5[%c0_27, %c0_28] : memref<32x128xbf16, #tpu.memory_space<vmem>>, vector<32x128xbf16>
    %c0_29 = arith.constant 0 : index
    %c0_30 = arith.constant 0 : index
    %180 = vector.load %arg6[%c0_29, %c0_30] : memref<1x128xf32, #tpu.memory_space<vmem>>, vector<1x128xf32>
    %cst_31 = arith.constant dense<0.000000e+00> : vector<16x128xf32>
    %181 = tpu.matmul %177, %178, %cst_31 {dimension_numbers = #tpu.dot_dimension_numbers<[1], [0], [0], [1], [0, 0, 1, 1], [], []>} : vector<16x32xbf16>, vector<32x128xbf16>, vector<16x128xf32> -> vector<16x128xf32>
    %182 = vector.broadcast %180 : vector<1x128xf32> to vector<16x128xf32>
    %183 = arith.addf %181, %182 : vector<16x128xf32>
    %cst_32 = arith.constant 0.000000e+00 : f32
    %184 = vector.broadcast %cst_32 : f32 to vector<2x32xf32>
    %cst_33 = arith.constant 0.000000e+00 : f32
    %185 = vector.broadcast %cst_33 : f32 to vector<2x32xf32>
    %186 = vector.extract_strided_slice %183 {offsets = [0, 0], sizes = [2, 128], strides = [1, 1]} : vector<16x128xf32> to vector<2x128xf32>
    %187 = arith.truncf %184 : vector<2x32xf32> to vector<2x32xbf16>
    %cst_34 = arith.constant dense<0.000000e+00> : vector<2x128xf32>
    %188 = tpu.matmul %187, %179, %cst_34 {dimension_numbers = #tpu.dot_dimension_numbers<[1], [0], [0], [1], [0, 0, 1, 1], [], []>} : vector<2x32xbf16>, vector<32x128xbf16>, vector<2x128xf32> -> vector<2x128xf32>
    %189 = arith.addf %186, %188 : vector<2x128xf32>
    %190 = vector.extract_strided_slice %189 {offsets = [0, 0], sizes = [2, 96], strides = [1, 1]} : vector<2x128xf32> to vector<2x96xf32>
    %191 = arith.negf %190 : vector<2x96xf32>
    %192 = math.exp %191 : vector<2x96xf32>
    %cst_35 = arith.constant 1.000000e+00 : f32
    %193 = vector.broadcast %cst_35 : f32 to vector<2x96xf32>
    %194 = arith.addf %193, %192 : vector<2x96xf32>
    %195 = arith.divf %193, %194 : vector<2x96xf32>
    %196 = vector.extract_strided_slice %189 {offsets = [0, 96], sizes = [2, 32], strides = [1, 1]} : vector<2x128xf32> to vector<2x32xf32>
    %197 = math.tanh %196 : vector<2x32xf32>
    %198 = vector.extract_strided_slice %195 {offsets = [0, 0], sizes = [2, 32], strides = [1, 1]} : vector<2x96xf32> to vector<2x32xf32>
    %199 = vector.extract_strided_slice %195 {offsets = [0, 32], sizes = [2, 32], strides = [1, 1]} : vector<2x96xf32> to vector<2x32xf32>
    %200 = vector.extract_strided_slice %195 {offsets = [0, 64], sizes = [2, 32], strides = [1, 1]} : vector<2x96xf32> to vector<2x32xf32>
    %201 = arith.mulf %199, %185 : vector<2x32xf32>
    %202 = arith.mulf %198, %197 : vector<2x32xf32>
    %203 = arith.addf %201, %202 : vector<2x32xf32>
    %204 = math.tanh %203 : vector<2x32xf32>
    %205 = arith.mulf %200, %204 : vector<2x32xf32>
    %206 = vector.extract_strided_slice %183 {offsets = [2, 0], sizes = [2, 128], strides = [1, 1]} : vector<16x128xf32> to vector<2x128xf32>
    %207 = arith.truncf %205 : vector<2x32xf32> to vector<2x32xbf16>
    %cst_36 = arith.constant dense<0.000000e+00> : vector<2x128xf32>
    %208 = tpu.matmul %207, %179, %cst_36 {dimension_numbers = #tpu.dot_dimension_numbers<[1], [0], [0], [1], [0, 0, 1, 1], [], []>} : vector<2x32xbf16>, vector<32x128xbf16>, vector<2x128xf32> -> vector<2x128xf32>
    %209 = arith.addf %206, %208 : vector<2x128xf32>
    %210 = vector.extract_strided_slice %209 {offsets = [0, 0], sizes = [2, 96], strides = [1, 1]} : vector<2x128xf32> to vector<2x96xf32>
    %211 = arith.negf %210 : vector<2x96xf32>
    %212 = math.exp %211 : vector<2x96xf32>
    %cst_37 = arith.constant 1.000000e+00 : f32
    %213 = vector.broadcast %cst_37 : f32 to vector<2x96xf32>
    %214 = arith.addf %213, %212 : vector<2x96xf32>
    %215 = arith.divf %213, %214 : vector<2x96xf32>
    %216 = vector.extract_strided_slice %209 {offsets = [0, 96], sizes = [2, 32], strides = [1, 1]} : vector<2x128xf32> to vector<2x32xf32>
    %217 = math.tanh %216 : vector<2x32xf32>
    %218 = vector.extract_strided_slice %215 {offsets = [0, 0], sizes = [2, 32], strides = [1, 1]} : vector<2x96xf32> to vector<2x32xf32>
    %219 = vector.extract_strided_slice %215 {offsets = [0, 32], sizes = [2, 32], strides = [1, 1]} : vector<2x96xf32> to vector<2x32xf32>
    %220 = vector.extract_strided_slice %215 {offsets = [0, 64], sizes = [2, 32], strides = [1, 1]} : vector<2x96xf32> to vector<2x32xf32>
    %221 = arith.mulf %219, %203 : vector<2x32xf32>
    %222 = arith.mulf %218, %217 : vector<2x32xf32>
    %223 = arith.addf %221, %222 : vector<2x32xf32>
    %224 = math.tanh %223 : vector<2x32xf32>
    %225 = arith.mulf %220, %224 : vector<2x32xf32>
    %226 = vector.extract_strided_slice %183 {offsets = [4, 0], sizes = [2, 128], strides = [1, 1]} : vector<16x128xf32> to vector<2x128xf32>
    %227 = arith.truncf %225 : vector<2x32xf32> to vector<2x32xbf16>
    %cst_38 = arith.constant dense<0.000000e+00> : vector<2x128xf32>
    %228 = tpu.matmul %227, %179, %cst_38 {dimension_numbers = #tpu.dot_dimension_numbers<[1], [0], [0], [1], [0, 0, 1, 1], [], []>} : vector<2x32xbf16>, vector<32x128xbf16>, vector<2x128xf32> -> vector<2x128xf32>
    %229 = arith.addf %226, %228 : vector<2x128xf32>
    %230 = vector.extract_strided_slice %229 {offsets = [0, 0], sizes = [2, 96], strides = [1, 1]} : vector<2x128xf32> to vector<2x96xf32>
    %231 = arith.negf %230 : vector<2x96xf32>
    %232 = math.exp %231 : vector<2x96xf32>
    %cst_39 = arith.constant 1.000000e+00 : f32
    %233 = vector.broadcast %cst_39 : f32 to vector<2x96xf32>
    %234 = arith.addf %233, %232 : vector<2x96xf32>
    %235 = arith.divf %233, %234 : vector<2x96xf32>
    %236 = vector.extract_strided_slice %229 {offsets = [0, 96], sizes = [2, 32], strides = [1, 1]} : vector<2x128xf32> to vector<2x32xf32>
    %237 = math.tanh %236 : vector<2x32xf32>
    %238 = vector.extract_strided_slice %235 {offsets = [0, 0], sizes = [2, 32], strides = [1, 1]} : vector<2x96xf32> to vector<2x32xf32>
    %239 = vector.extract_strided_slice %235 {offsets = [0, 32], sizes = [2, 32], strides = [1, 1]} : vector<2x96xf32> to vector<2x32xf32>
    %240 = vector.extract_strided_slice %235 {offsets = [0, 64], sizes = [2, 32], strides = [1, 1]} : vector<2x96xf32> to vector<2x32xf32>
    %241 = arith.mulf %239, %223 : vector<2x32xf32>
    %242 = arith.mulf %238, %237 : vector<2x32xf32>
    %243 = arith.addf %241, %242 : vector<2x32xf32>
    %244 = math.tanh %243 : vector<2x32xf32>
    %245 = arith.mulf %240, %244 : vector<2x32xf32>
    %246 = vector.extract_strided_slice %183 {offsets = [6, 0], sizes = [2, 128], strides = [1, 1]} : vector<16x128xf32> to vector<2x128xf32>
    %247 = arith.truncf %245 : vector<2x32xf32> to vector<2x32xbf16>
    %cst_40 = arith.constant dense<0.000000e+00> : vector<2x128xf32>
    %248 = tpu.matmul %247, %179, %cst_40 {dimension_numbers = #tpu.dot_dimension_numbers<[1], [0], [0], [1], [0, 0, 1, 1], [], []>} : vector<2x32xbf16>, vector<32x128xbf16>, vector<2x128xf32> -> vector<2x128xf32>
    %249 = arith.addf %246, %248 : vector<2x128xf32>
    %250 = vector.extract_strided_slice %249 {offsets = [0, 0], sizes = [2, 96], strides = [1, 1]} : vector<2x128xf32> to vector<2x96xf32>
    %251 = arith.negf %250 : vector<2x96xf32>
    %252 = math.exp %251 : vector<2x96xf32>
    %cst_41 = arith.constant 1.000000e+00 : f32
    %253 = vector.broadcast %cst_41 : f32 to vector<2x96xf32>
    %254 = arith.addf %253, %252 : vector<2x96xf32>
    %255 = arith.divf %253, %254 : vector<2x96xf32>
    %256 = vector.extract_strided_slice %249 {offsets = [0, 96], sizes = [2, 32], strides = [1, 1]} : vector<2x128xf32> to vector<2x32xf32>
    %257 = math.tanh %256 : vector<2x32xf32>
    %258 = vector.extract_strided_slice %255 {offsets = [0, 0], sizes = [2, 32], strides = [1, 1]} : vector<2x96xf32> to vector<2x32xf32>
    %259 = vector.extract_strided_slice %255 {offsets = [0, 32], sizes = [2, 32], strides = [1, 1]} : vector<2x96xf32> to vector<2x32xf32>
    %260 = vector.extract_strided_slice %255 {offsets = [0, 64], sizes = [2, 32], strides = [1, 1]} : vector<2x96xf32> to vector<2x32xf32>
    %261 = arith.mulf %259, %243 : vector<2x32xf32>
    %262 = arith.mulf %258, %257 : vector<2x32xf32>
    %263 = arith.addf %261, %262 : vector<2x32xf32>
    %264 = math.tanh %263 : vector<2x32xf32>
    %265 = arith.mulf %260, %264 : vector<2x32xf32>
    %266 = vector.extract_strided_slice %183 {offsets = [8, 0], sizes = [2, 128], strides = [1, 1]} : vector<16x128xf32> to vector<2x128xf32>
    %267 = arith.truncf %265 : vector<2x32xf32> to vector<2x32xbf16>
    %cst_42 = arith.constant dense<0.000000e+00> : vector<2x128xf32>
    %268 = tpu.matmul %267, %179, %cst_42 {dimension_numbers = #tpu.dot_dimension_numbers<[1], [0], [0], [1], [0, 0, 1, 1], [], []>} : vector<2x32xbf16>, vector<32x128xbf16>, vector<2x128xf32> -> vector<2x128xf32>
    %269 = arith.addf %266, %268 : vector<2x128xf32>
    %270 = vector.extract_strided_slice %269 {offsets = [0, 0], sizes = [2, 96], strides = [1, 1]} : vector<2x128xf32> to vector<2x96xf32>
    %271 = arith.negf %270 : vector<2x96xf32>
    %272 = math.exp %271 : vector<2x96xf32>
    %cst_43 = arith.constant 1.000000e+00 : f32
    %273 = vector.broadcast %cst_43 : f32 to vector<2x96xf32>
    %274 = arith.addf %273, %272 : vector<2x96xf32>
    %275 = arith.divf %273, %274 : vector<2x96xf32>
    %276 = vector.extract_strided_slice %269 {offsets = [0, 96], sizes = [2, 32], strides = [1, 1]} : vector<2x128xf32> to vector<2x32xf32>
    %277 = math.tanh %276 : vector<2x32xf32>
    %278 = vector.extract_strided_slice %275 {offsets = [0, 0], sizes = [2, 32], strides = [1, 1]} : vector<2x96xf32> to vector<2x32xf32>
    %279 = vector.extract_strided_slice %275 {offsets = [0, 32], sizes = [2, 32], strides = [1, 1]} : vector<2x96xf32> to vector<2x32xf32>
    %280 = vector.extract_strided_slice %275 {offsets = [0, 64], sizes = [2, 32], strides = [1, 1]} : vector<2x96xf32> to vector<2x32xf32>
    %281 = arith.mulf %279, %263 : vector<2x32xf32>
    %282 = arith.mulf %278, %277 : vector<2x32xf32>
    %283 = arith.addf %281, %282 : vector<2x32xf32>
    %284 = math.tanh %283 : vector<2x32xf32>
    %285 = arith.mulf %280, %284 : vector<2x32xf32>
    %286 = vector.extract_strided_slice %183 {offsets = [10, 0], sizes = [2, 128], strides = [1, 1]} : vector<16x128xf32> to vector<2x128xf32>
    %287 = arith.truncf %285 : vector<2x32xf32> to vector<2x32xbf16>
    %cst_44 = arith.constant dense<0.000000e+00> : vector<2x128xf32>
    %288 = tpu.matmul %287, %179, %cst_44 {dimension_numbers = #tpu.dot_dimension_numbers<[1], [0], [0], [1], [0, 0, 1, 1], [], []>} : vector<2x32xbf16>, vector<32x128xbf16>, vector<2x128xf32> -> vector<2x128xf32>
    %289 = arith.addf %286, %288 : vector<2x128xf32>
    %290 = vector.extract_strided_slice %289 {offsets = [0, 0], sizes = [2, 96], strides = [1, 1]} : vector<2x128xf32> to vector<2x96xf32>
    %291 = arith.negf %290 : vector<2x96xf32>
    %292 = math.exp %291 : vector<2x96xf32>
    %cst_45 = arith.constant 1.000000e+00 : f32
    %293 = vector.broadcast %cst_45 : f32 to vector<2x96xf32>
    %294 = arith.addf %293, %292 : vector<2x96xf32>
    %295 = arith.divf %293, %294 : vector<2x96xf32>
    %296 = vector.extract_strided_slice %289 {offsets = [0, 96], sizes = [2, 32], strides = [1, 1]} : vector<2x128xf32> to vector<2x32xf32>
    %297 = math.tanh %296 : vector<2x32xf32>
    %298 = vector.extract_strided_slice %295 {offsets = [0, 0], sizes = [2, 32], strides = [1, 1]} : vector<2x96xf32> to vector<2x32xf32>
    %299 = vector.extract_strided_slice %295 {offsets = [0, 32], sizes = [2, 32], strides = [1, 1]} : vector<2x96xf32> to vector<2x32xf32>
    %300 = vector.extract_strided_slice %295 {offsets = [0, 64], sizes = [2, 32], strides = [1, 1]} : vector<2x96xf32> to vector<2x32xf32>
    %301 = arith.mulf %299, %283 : vector<2x32xf32>
    %302 = arith.mulf %298, %297 : vector<2x32xf32>
    %303 = arith.addf %301, %302 : vector<2x32xf32>
    %304 = math.tanh %303 : vector<2x32xf32>
    %305 = arith.mulf %300, %304 : vector<2x32xf32>
    %306 = vector.extract_strided_slice %183 {offsets = [12, 0], sizes = [2, 128], strides = [1, 1]} : vector<16x128xf32> to vector<2x128xf32>
    %307 = arith.truncf %305 : vector<2x32xf32> to vector<2x32xbf16>
    %cst_46 = arith.constant dense<0.000000e+00> : vector<2x128xf32>
    %308 = tpu.matmul %307, %179, %cst_46 {dimension_numbers = #tpu.dot_dimension_numbers<[1], [0], [0], [1], [0, 0, 1, 1], [], []>} : vector<2x32xbf16>, vector<32x128xbf16>, vector<2x128xf32> -> vector<2x128xf32>
    %309 = arith.addf %306, %308 : vector<2x128xf32>
    %310 = vector.extract_strided_slice %309 {offsets = [0, 0], sizes = [2, 96], strides = [1, 1]} : vector<2x128xf32> to vector<2x96xf32>
    %311 = arith.negf %310 : vector<2x96xf32>
    %312 = math.exp %311 : vector<2x96xf32>
    %cst_47 = arith.constant 1.000000e+00 : f32
    %313 = vector.broadcast %cst_47 : f32 to vector<2x96xf32>
    %314 = arith.addf %313, %312 : vector<2x96xf32>
    %315 = arith.divf %313, %314 : vector<2x96xf32>
    %316 = vector.extract_strided_slice %309 {offsets = [0, 96], sizes = [2, 32], strides = [1, 1]} : vector<2x128xf32> to vector<2x32xf32>
    %317 = math.tanh %316 : vector<2x32xf32>
    %318 = vector.extract_strided_slice %315 {offsets = [0, 0], sizes = [2, 32], strides = [1, 1]} : vector<2x96xf32> to vector<2x32xf32>
    %319 = vector.extract_strided_slice %315 {offsets = [0, 32], sizes = [2, 32], strides = [1, 1]} : vector<2x96xf32> to vector<2x32xf32>
    %320 = vector.extract_strided_slice %315 {offsets = [0, 64], sizes = [2, 32], strides = [1, 1]} : vector<2x96xf32> to vector<2x32xf32>
    %321 = arith.mulf %319, %303 : vector<2x32xf32>
    %322 = arith.mulf %318, %317 : vector<2x32xf32>
    %323 = arith.addf %321, %322 : vector<2x32xf32>
    %324 = math.tanh %323 : vector<2x32xf32>
    %325 = arith.mulf %320, %324 : vector<2x32xf32>
    %326 = vector.extract_strided_slice %183 {offsets = [14, 0], sizes = [2, 128], strides = [1, 1]} : vector<16x128xf32> to vector<2x128xf32>
    %327 = arith.truncf %325 : vector<2x32xf32> to vector<2x32xbf16>
    %cst_48 = arith.constant dense<0.000000e+00> : vector<2x128xf32>
    %328 = tpu.matmul %327, %179, %cst_48 {dimension_numbers = #tpu.dot_dimension_numbers<[1], [0], [0], [1], [0, 0, 1, 1], [], []>} : vector<2x32xbf16>, vector<32x128xbf16>, vector<2x128xf32> -> vector<2x128xf32>
    %329 = arith.addf %326, %328 : vector<2x128xf32>
    %330 = vector.extract_strided_slice %329 {offsets = [0, 0], sizes = [2, 96], strides = [1, 1]} : vector<2x128xf32> to vector<2x96xf32>
    %331 = arith.negf %330 : vector<2x96xf32>
    %332 = math.exp %331 : vector<2x96xf32>
    %cst_49 = arith.constant 1.000000e+00 : f32
    %333 = vector.broadcast %cst_49 : f32 to vector<2x96xf32>
    %334 = arith.addf %333, %332 : vector<2x96xf32>
    %335 = arith.divf %333, %334 : vector<2x96xf32>
    %336 = vector.extract_strided_slice %329 {offsets = [0, 96], sizes = [2, 32], strides = [1, 1]} : vector<2x128xf32> to vector<2x32xf32>
    %337 = math.tanh %336 : vector<2x32xf32>
    %338 = vector.extract_strided_slice %335 {offsets = [0, 0], sizes = [2, 32], strides = [1, 1]} : vector<2x96xf32> to vector<2x32xf32>
    %339 = vector.extract_strided_slice %335 {offsets = [0, 32], sizes = [2, 32], strides = [1, 1]} : vector<2x96xf32> to vector<2x32xf32>
    %340 = vector.extract_strided_slice %335 {offsets = [0, 64], sizes = [2, 32], strides = [1, 1]} : vector<2x96xf32> to vector<2x32xf32>
    %341 = arith.mulf %339, %323 : vector<2x32xf32>
    %342 = arith.mulf %338, %337 : vector<2x32xf32>
    %343 = arith.addf %341, %342 : vector<2x32xf32>
    %344 = math.tanh %343 : vector<2x32xf32>
    %345 = arith.mulf %340, %344 : vector<2x32xf32>
    %c0_50 = arith.constant 0 : index
    %c0_51 = arith.constant 0 : index
    %346 = vector.load %arg7[%c0_50, %c0_51] : memref<32x16xbf16, #tpu.memory_space<vmem>>, vector<32x16xbf16>
    %c0_52 = arith.constant 0 : index
    %c0_53 = arith.constant 0 : index
    %347 = vector.load %arg8[%c0_52, %c0_53] : memref<1x16xf32, #tpu.memory_space<vmem>>, vector<1x16xf32>
    %348 = arith.truncf %345 : vector<2x32xf32> to vector<2x32xbf16>
    %cst_54 = arith.constant dense<0.000000e+00> : vector<2x16xf32>
    %349 = tpu.matmul %348, %346, %cst_54 {dimension_numbers = #tpu.dot_dimension_numbers<[1], [0], [0], [1], [0, 0, 1, 1], [], []>} : vector<2x32xbf16>, vector<32x16xbf16>, vector<2x16xf32> -> vector<2x16xf32>
    %350 = vector.broadcast %347 : vector<1x16xf32> to vector<2x16xf32>
    %351 = arith.addf %349, %350 : vector<2x16xf32>
    %352 = arith.negf %351 : vector<2x16xf32>
    %353 = math.exp %352 : vector<2x16xf32>
    %cst_55 = arith.constant 1.000000e+00 : f32
    %354 = vector.broadcast %cst_55 : f32 to vector<2x16xf32>
    %355 = arith.addf %354, %353 : vector<2x16xf32>
    %356 = arith.divf %354, %355 : vector<2x16xf32>
    %c0_56 = arith.constant 0 : index
    %c0_57 = arith.constant 0 : index
    %357 = vector.load %arg9[%c0_56, %c0_57] : memref<16x8xbf16, #tpu.memory_space<vmem>>, vector<16x8xbf16>
    %c0_58 = arith.constant 0 : index
    %c0_59 = arith.constant 0 : index
    %358 = vector.load %arg10[%c0_58, %c0_59] : memref<1x8xf32, #tpu.memory_space<vmem>>, vector<1x8xf32>
    %359 = arith.truncf %356 : vector<2x16xf32> to vector<2x16xbf16>
    %cst_60 = arith.constant dense<0.000000e+00> : vector<2x8xf32>
    %360 = tpu.matmul %359, %357, %cst_60 {dimension_numbers = #tpu.dot_dimension_numbers<[1], [0], [0], [1], [0, 0, 1, 1], [], []>} : vector<2x16xbf16>, vector<16x8xbf16>, vector<2x8xf32> -> vector<2x8xf32>
    %361 = vector.broadcast %358 : vector<1x8xf32> to vector<2x8xf32>
    %362 = arith.addf %360, %361 : vector<2x8xf32>
    %363 = arith.negf %362 : vector<2x8xf32>
    %364 = math.exp %363 : vector<2x8xf32>
    %cst_61 = arith.constant 1.000000e+00 : f32
    %365 = vector.broadcast %cst_61 : f32 to vector<2x8xf32>
    %366 = arith.addf %365, %364 : vector<2x8xf32>
    %367 = arith.divf %365, %366 : vector<2x8xf32>
    %c0_62 = arith.constant 0 : index
    %c0_63 = arith.constant 0 : index
    %368 = vector.load %arg11[%c0_62, %c0_63] : memref<8x1xbf16, #tpu.memory_space<vmem>>, vector<8x1xbf16>
    %c0_64 = arith.constant 0 : index
    %c0_65 = arith.constant 0 : index
    %369 = vector.load %arg12[%c0_64, %c0_65] : memref<1x1xf32, #tpu.memory_space<vmem>>, vector<1x1xf32>
    %370 = arith.truncf %367 : vector<2x8xf32> to vector<2x8xbf16>
    %cst_66 = arith.constant dense<0.000000e+00> : vector<2x1xf32>
    %371 = tpu.matmul %370, %368, %cst_66 {dimension_numbers = #tpu.dot_dimension_numbers<[1], [0], [0], [1], [0, 0, 1, 1], [], []>} : vector<2x8xbf16>, vector<8x1xbf16>, vector<2x1xf32> -> vector<2x1xf32>
    %372 = vector.broadcast %369 : vector<1x1xf32> to vector<2x1xf32>
    %373 = arith.addf %371, %372 : vector<2x1xf32>
    %c0_67 = arith.constant 0 : index
    %c0_68 = arith.constant 0 : index
    %374 = vector.load %arg13[%c0_67, %c0_68] : memref<2x1xf32, #tpu.memory_space<vmem>>, vector<2x1xf32>
    tpu.vector_store %arg13[%c0_67, %c0_68], %373 {strides = array<i32>} : memref<2x1xf32, #tpu.memory_space<vmem>>, vector<2x1xf32>,
    return
  }
}

</mosaic_0001>

<bundles_post_ra>
// kernel: tpu_custom_call.1
= control target key start
LH: loop header
LB: loop body
LE: loop exit
PB: predicated region body
PF: predicated region fallthrough
CT: control target
= control target key end

     0   :  { %s2512_s0 = inlined_call_operand.vmem [shape: bf16[16,4], index: 0, kind: input, shape index: {}]   ;;  %s2513_s1 = inlined_call_operand.hbm [shape: bf16[4,128], index: 1, kind: input, shape index: {}]   ;;  %s2514_s2 = inlined_call_operand.vmem [shape: bf16[32,128], index: 2, kind: input, shape index: {}]   ;;  %s2515_s3 = inlined_call_operand.vmem [shape: f32[1,128], index: 3, kind: input, shape index: {}]   ;;  %s2516_s4 = inlined_call_operand.vmem [shape: bf16[32,128], index: 4, kind: input, shape index: {}]   ;;  %s2517_s5 = inlined_call_operand.vmem [shape: bf16[32,128], index: 5, kind: input, shape index: {}]   ;;  %s2518_s6 = inlined_call_operand.vmem [shape: f32[1,128], index: 6, kind: input, shape index: {}]   ;;  %s2519_s7 = inlined_call_operand.vmem [shape: bf16[32,16], index: 7, kind: input, shape index: {}]   ;;  %s2520_s8 = inlined_call_operand.vmem [shape: f32[1,16], index: 8, kind: input, shape index: {}]   ;;  %s2521_s9 = inlined_call_operand.vmem [shape: bf16[16,8], index: 9, kind: input, shape index: {}]   ;;  %s2522_s10 = inlined_call_operand.vmem [shape: f32[1,8], index: 10, kind: input, shape index: {}]   ;;  %s2523_s11 = inlined_call_operand.vmem [shape: bf16[8,1], index: 11, kind: input, shape index: {}]   ;;  %s2524_s12 = inlined_call_operand.<no memory space> [shape: f32[1,1], index: 12, kind: input, shape index: {}]   ;;  %s2525_s13 = inlined_call_operand.vmem [shape: f32[2,1], index: 13, kind: output, shape index: {}]  }
   0x1   :  { %v18_v0 = vstv %s2524_s12 }
   0x2   :  { %19 = vst [vmem:[#allocation2] sm:$0x1] %v18_v0 }
   0x3   :  { %20 = vsyncpa [#allocation4], 0  ;;  %s2138_s27 = smov [#allocation3]   ;;  %s2114_s14 = scalar_lea.hbm %s2513_s1, 32 }
   0x4   :  { %s29_s28 = sshll.u32 %s2138_s27, 4  ;;  %p2115_p0 = scmp.ne.s32.totalorder %s2513_s1, %s2114_s14  ;;  %s30_s28 = int_to_ptr.vmem [resolvable:$true] %s29_s28 }
   0x5   :  { %p2118_p1 = scmp.lt.u32.totalorder %s2114_s14, %s2513_s1 }
   0x7   :  { %p2120_p2 = pnand %p2118_p1, %p2115_p0 }
   0x9   :  { %2123 = shalt.err (!%p2120_p2)
}
   0xa   :  { %s2124_s12 = scalar_lea.vmem %s30_s28, 32  ;;  %p2129_p4 = scmp.lt.s32.totalorder %s30_s28, %s30_s28 }
   0xb   :  { %p2125_p3 = scmp.ne.s32.totalorder %s30_s28, %s2124_s12  ;;  %p2130_p5 = scmp.lt.s32.totalorder %s2124_s12, %s2124_s12 }
   0xd   :  { %p2131_p6 = por %p2130_p5, %p2129_p4 }
   0xf   :  { %p2132_p7 = pnand %p2131_p6, %p2125_p3 }
  0x11   :  { %2135 = shalt.err (!%p2132_p7)
}
  0x12   :  { %32 = dma.hbm_to_vmem [thread:$0]  %s2513_s1, 32, %s30_s28, [#allocation4]  }
  0x13   :  { %2136 = dma.done.wait [#allocation4], 32  }
  0x14   :  { %2137 = vsyncadd [#allocation4], 4294967264  ;;  %v2139_v1 = vmov 0.0   ;;  %vm2140_vm0 = vmmov 0   ;;  %vm82_vm1 = vcmask 1041408   ;;  %v2239_v4 = vld [vmem:[%s2514_s2] sm:$0xff]  }
  0x15   :  { %1800 = vmatprep.subr.bf16.mxu0 %v2139_v1  ;;  %1806 = vmatprep.subr.bf16.mxu1 %v2139_v1  ;;  %v61_v2 = vld [vmem:[#allocation3] sm:$0x3]  ;;  %vm78_vm2 = vcmask 31744   ;;  %v2248_v6 = vld [vmem:[%s2514_s2 + $0x8] sm:$0xff]   ;;  %v2141_v7 = vmov 0   ;;  %s2142_s26 = smov 32  }
  0x16   :  { %1802 = vmatprep.mubr.msk.bf16.mxu0 %vm2140_vm0, %v2139_v1  ;;  %1810 = vmatprep.mubr.msk.bf16.mxu1 %vm2140_vm0, %v2139_v1  ;;  %v84_v3 = vsel %vm82_vm1, %v61_v2, 0  ;;  %v1969_v5 = vld [vmem:[%s2512_s0] sm:$0xff]   ;;  %vm139_vm3 = vcmask 261120   ;;  %vm762_vm4 = vcmask 1040384   ;;  %vm768_vm5 = vcmask 1042432  }
  0x17   :  { %1801 = vmatpush3.bf16.msra.mxu0 %v84_v3  ;;  %1807 = vmatpush3.bf16.msra.mxu1 %v2239_v4  ;;  %v1688_v8 = vld [vmem:[%s2515_s3] ss:$0 sm:$0xff]  ;;  %s2143_s3 = smov 64   ;;  %vm771_vm6 = vcmask 1043456   ;;  %vm774_vm7 = vcmask 1044480   ;;  %vm777_vm8 = vcmask 1045504  }
  0x18   :  { %1814 = vmatprep.subr.bf16.mxu0 %v2139_v1  ;;  %1808 = vmatprep.subr.bf16.mxu1 %v2139_v1  ;;  %vm780_vm9 = vcmask 1046528   ;;  %vm1575_vm10 = vcmask 130048   ;;  %vm1634_vm11 = vcmask 64512   ;;  %vm1681_vm12 = vcmask 1024  }
  0x1a   :  { %1803 = vmatmul.mubr.msk.bf16.vlgmr.msra.gmra.mrb[0].mxu0 %vm78_vm2, %v1969_v5 }
  0x1b   :  { %1815 = vmatpush3.bf16.msra.mxu0 %v2239_v4  ;;  %1818 = vmatprep.mubr.msk.bf16.mxu0 %vm2140_vm0, %v2139_v1 }
  0x1c   :  { %1809 = vmatpush3.bf16.msra.mxu1 %v2248_v6  ;;  %1816 = vmatprep.subr.bf16.mxu0 %v2139_v1 }
  0x1d   :  { %1822 = vmatprep.subr.bf16.mxu1 %v2139_v1 }
  0x1f   :  { %1811 = vmatmul.mubr.bf16.vlgmr.msra.gmra.mrb[0].mxu1 %v2141_v7  ;;  %1817 = vmatpush3.bf16.msra.mxu0 %v2248_v6 }
  0x20   :  { %1823 = vmatpush3.bf16.msra.mxu1 %v2239_v4  ;;  %1826 = vmatprep.mubr.msk.bf16.mxu1 %vm2140_vm0, %v2139_v1 }
  0x21   :  { %1824 = vmatprep.subr.bf16.mxu1 %v2139_v1  ;;  %1830 = vmatprep.subr.bf16.mxu0 %v2139_v1 }
  0x24   :  { %1825 = vmatpush3.bf16.msra.mxu1 %v2248_v6 }
  0x25   :  { %1838 = vmatprep.subr.bf16.mxu1 %v2139_v1 }
  0xed   :  { %v120_v9 = vpop.f32.mrb[0].mxu0 }
  0xee   :  { %v1804_v10 = vpop.f32.mrb[1].mxu0  ;;  %v2270_v11 = vadd.f32 %v1688_v8, %v120_v9 }
  0xef   :  { %v123_v12 = vpop.f32.mrb[2].mxu0 }
  0xf0   :  { %v2272_v13 = vadd.f32 %v1688_v8, %v123_v12  ;;  %v1805_v14 = vpop.f32.mrb[3].mxu0 }
  0xf2   :  { %v177_v15 = vpop.f32.mrb[0].mxu1 }
  0xf3   :  { %v183_v16 = vadd.f32 %v177_v15, %v2270_v11  ;;  %v1812_v17 = vpop.f32.mrb[1].mxu1 }
  0xf4   :  { %v180_v18 = vpop.f32.mrb[2].mxu1 }
  0xf5   :  { %1978 = vtanh.f32 %v183_v16  ;;  %v1813_v19 = vpop.f32.mrb[3].mxu1  ;;  %v1693_v21 = vmul.f32 -1.442695, %v183_v16 }
  0xf7   :  { %1980 = vpow2.f32 %v1693_v21 }
  0xff   :  { %v1979_v20 = vpop.eup %1978 }
 0x100   :  { %193 = vrot.lane.b32.xlu0 %v1979_v20, %s2142_s26 }
 0x101   :  { %v1981_v22 = vpop.eup %1980 }
 0x102   :  { %v187_v23 = vadd.f32 1.0, %v1981_v22 }
 0x104   :  { %1982 = vrcp.f32 %v187_v23 }
 0x10e   :  { %v1983_v24 = vpop.eup %1982 }
 0x10f   :  { %v191_v27 = vmul.f32 0.0, %v1983_v24 }
 0x172   :  { %v194_v25 = vpop.permute.xlu0 %193 }
 0x173   :  { %v196_v26 = vmul.f32 %v1983_v24, %v194_v25 }
 0x175   :  { %198 = vrot.lane.b32.xlu0 %v196_v26, %s2142_s26 }
 0x1e7   :  { %v199_v28 = vpop.permute.xlu0 %198 }
 0x1e8   :  { %v201_v29 = vadd.f32 %v199_v28, %v191_v27 }
 0x1ea   :  { %1984 = vtanh.f32 %v201_v29  ;;  %v267_v48 = vrot.slane %v201_v29, 6 }
 0x1f4   :  { %v1985_v30 = vpop.eup %1984 }
 0x1f5   :  { %204 = vrot.lane.b32.xlu1 %v1985_v30, %s2142_s26 }
 0x267   :  { %v205_v31 = vpop.permute.xlu1 %204 }
 0x268   :  { %v207_v32 = vmul.f32 %v1983_v24, %v205_v31 }
 0x26a   :  { %v2278_v33 = vpack.c.bf16 %v207_v32, %v207_v32 }
 0x26c   :  { %210 = vrot.lane.b32.xlu1 %v2278_v33, %s2143_s3 }
 0x2de   :  { %v211_v34 = vpop.permute.xlu1 %210 }
 0x2df   :  { %1819 = vmatmul.mubr.msk.bf16.vlgmr.msra.gmra.mrb[4].mxu0 %vm139_vm3, %v211_v34 }
 0x2e0   :  { %1831 = vmatpush3.bf16.msra.mxu0 %v2239_v4  ;;  %1834 = vmatprep.mubr.msk.bf16.mxu0 %vm2140_vm0, %v2139_v1 }
 0x2e1   :  { %1832 = vmatprep.subr.bf16.mxu0 %v2139_v1 }
 0x2e4   :  { %1833 = vmatpush3.bf16.msra.mxu0 %v2248_v6 }
 0x2e5   :  { %1846 = vmatprep.subr.bf16.mxu0 %v2139_v1 }
 0x3b2   :  { %v249_v35 = vpop.f32.mrb[4].mxu0 }
 0x3b3   :  { %v256_v36 = vrot.slane %v249_v35, 6  ;;  %v1820_v37 = vpop.f32.mrb[5].mxu0 }
 0x3b4   :  { %v252_v38 = vpop.f32.mrb[6].mxu0 }
 0x3b5   :  { %v258_v39 = vadd.f32 %v256_v36, %v2270_v11  ;;  %v1821_v40 = vpop.f32.mrb[7].mxu0 }
 0x3b7   :  { %1986 = vtanh.f32 %v258_v39  ;;  %v1695_v42 = vmul.f32 -1.442695, %v258_v39 }
 0x3b9   :  { %1988 = vpow2.f32 %v1695_v42 }
 0x3c1   :  { %v1987_v41 = vpop.eup %1986 }
 0x3c2   :  { %271 = vrot.lane.b32.xlu0 %v1987_v41, %s2142_s26 }
 0x3c3   :  { %v1989_v43 = vpop.eup %1988 }
 0x3c4   :  { %v262_v44 = vadd.f32 1.0, %v1989_v43 }
 0x3c6   :  { %1990 = vrcp.f32 %v262_v44 }
 0x3d0   :  { %v1991_v45 = vpop.eup %1990 }
 0x3d1   :  { %v269_v49 = vmul.f32 %v1991_v45, %v267_v48 }
 0x434   :  { %v272_v46 = vpop.permute.xlu0 %271 }
 0x435   :  { %v274_v47 = vmul.f32 %v1991_v45, %v272_v46 }
 0x437   :  { %276 = vrot.lane.b32.xlu1 %v274_v47, %s2142_s26 }
 0x4a9   :  { %v277_v50 = vpop.permute.xlu1 %276 }
 0x4aa   :  { %v279_v51 = vadd.f32 %v277_v50, %v269_v49 }
 0x4ac   :  { %1992 = vtanh.f32 %v279_v51  ;;  %v346_v12 = vrot.slane %v279_v51, 6 }
 0x4b6   :  { %v1993_v52 = vpop.eup %1992 }
 0x4b7   :  { %282 = vrot.lane.b32.xlu0 %v1993_v52, %s2142_s26 }
 0x529   :  { %v283_v53 = vpop.permute.xlu0 %282 }
 0x52a   :  { %v285_v54 = vmul.f32 %v1991_v45, %v283_v53 }
 0x52c   :  { %v286_v55 = vpack.c.bf16 %v285_v54, %v285_v54 }
 0x52e   :  { %v288_v56 = vrot.slane %v286_v55, 1  ;;  %v765_v21 = vsel %vm762_vm4, %v2278_v33, %v286_v55 }
 0x530   :  { %289 = vrot.lane.b32.xlu1 %v288_v56, %s2143_s3 }
 0x5a2   :  { %v290_v57 = vpop.permute.xlu1 %289 }
 0x5a3   :  { %1827 = vmatmul.mubr.msk.bf16.vlgmr.msra.gmra.mrb[4].mxu1 %vm139_vm3, %v290_v57 }
 0x5a4   :  { %1839 = vmatpush3.bf16.msra.mxu1 %v2239_v4  ;;  %1842 = vmatprep.mubr.msk.bf16.mxu1 %vm2140_vm0, %v2139_v1 }
 0x5a5   :  { %1840 = vmatprep.subr.bf16.mxu1 %v2139_v1 }
 0x5a8   :  { %1841 = vmatpush3.bf16.msra.mxu1 %v2248_v6 }
 0x5a9   :  { %1854 = vmatprep.subr.bf16.mxu1 %v2139_v1 }
 0x676   :  { %v328_v58 = vpop.f32.mrb[4].mxu1 }
 0x677   :  { %v335_v59 = vrot.slane %v328_v58, 4  ;;  %v1828_v60 = vpop.f32.mrb[5].mxu1 }
 0x678   :  { %v331_v61 = vpop.f32.mrb[6].mxu1 }
 0x679   :  { %v337_v62 = vadd.f32 %v335_v59, %v2270_v11  ;;  %v1829_v63 = vpop.f32.mrb[7].mxu1 }
 0x67b   :  { %1994 = vtanh.f32 %v337_v62  ;;  %v1697_v2 = vmul.f32 -1.442695, %v337_v62 }
 0x67d   :  { %1996 = vpow2.f32 %v1697_v2 }
 0x685   :  { %v1995_v0 = vpop.eup %1994 }
 0x686   :  { %350 = vrot.lane.b32.xlu0 %v1995_v0, %s2142_s26 }
 0x687   :  { %v1997_v3 = vpop.eup %1996 }
 0x688   :  { %v341_v5 = vadd.f32 1.0, %v1997_v3 }
 0x68a   :  { %1998 = vrcp.f32 %v341_v5 }
 0x694   :  { %v1999_v8 = vpop.eup %1998 }
 0x695   :  { %v348_v14 = vmul.f32 %v1999_v8, %v346_v12 }
 0x6f8   :  { %v351_v9 = vpop.permute.xlu0 %350 }
 0x6f9   :  { %v353_v10 = vmul.f32 %v1999_v8, %v351_v9 }
 0x6fb   :  { %355 = vrot.lane.b32.xlu1 %v353_v10, %s2142_s26 }
 0x76d   :  { %v356_v15 = vpop.permute.xlu1 %355 }
 0x76e   :  { %v358_v16 = vadd.f32 %v356_v15, %v348_v14 }
 0x770   :  { %2000 = vtanh.f32 %v358_v16  ;;  %v425_v38 = vrot.slane %v358_v16, 6 }
 0x77a   :  { %v2001_v17 = vpop.eup %2000 }
 0x77b   :  { %361 = vrot.lane.b32.xlu0 %v2001_v17, %s2142_s26 }
 0x7ed   :  { %v362_v18 = vpop.permute.xlu0 %361 }
 0x7ee   :  { %v364_v19 = vmul.f32 %v1999_v8, %v362_v18 }
 0x7f0   :  { %v365_v20 = vpack.c.bf16 %v364_v19, %v364_v19 }
 0x7f2   :  { %v367_v22 = vrot.slane %v365_v20, 2  ;;  %v767_v23 = vsel %vm82_vm1, %v765_v21, %v365_v20 }
 0x7f4   :  { %368 = vrot.lane.b32.xlu1 %v367_v22, %s2143_s3 }
 0x866   :  { %v369_v24 = vpop.permute.xlu1 %368 }
 0x867   :  { %1835 = vmatmul.mubr.msk.bf16.vlgmr.msra.gmra.mrb[8].mxu0 %vm139_vm3, %v369_v24 }
 0x868   :  { %1847 = vmatpush3.bf16.msra.mxu0 %v2239_v4  ;;  %1850 = vmatprep.mubr.msk.bf16.mxu0 %vm2140_vm0, %v2139_v1 }
 0x869   :  { %1848 = vmatprep.subr.bf16.mxu0 %v2139_v1 }
 0x86c   :  { %1849 = vmatpush3.bf16.msra.mxu0 %v2248_v6 }
 0x86d   :  { %1862 = vmatprep.subr.bf16.mxu0 %v2139_v1 }
 0x93a   :  { %v407_v25 = vpop.f32.mrb[8].mxu0 }
 0x93b   :  { %v414_v26 = vrot.slane %v407_v25, 2  ;;  %v1836_v27 = vpop.f32.mrb[9].mxu0 }
 0x93c   :  { %v410_v28 = vpop.f32.mrb[10].mxu0 }
 0x93d   :  { %v416_v29 = vadd.f32 %v414_v26, %v2270_v11  ;;  %v1837_v30 = vpop.f32.mrb[11].mxu0 }
 0x93f   :  { %2002 = vtanh.f32 %v416_v29  ;;  %v1699_v32 = vmul.f32 -1.442695, %v416_v29 }
 0x941   :  { %2004 = vpow2.f32 %v1699_v32 }
 0x949   :  { %v2003_v31 = vpop.eup %2002 }
 0x94a   :  { %429 = vrot.lane.b32.xlu0 %v2003_v31, %s2142_s26 }
 0x94b   :  { %v2005_v33 = vpop.eup %2004 }
 0x94c   :  { %v420_v34 = vadd.f32 1.0, %v2005_v33 }
 0x94e   :  { %2006 = vrcp.f32 %v420_v34 }
 0x958   :  { %v2007_v35 = vpop.eup %2006 }
 0x959   :  { %v427_v39 = vmul.f32 %v2007_v35, %v425_v38 }
 0x9bc   :  { %v430_v36 = vpop.permute.xlu0 %429 }
 0x9bd   :  { %v432_v37 = vmul.f32 %v2007_v35, %v430_v36 }
 0x9bf   :  { %434 = vrot.lane.b32.xlu1 %v432_v37, %s2142_s26 }
 0xa31   :  { %v435_v40 = vpop.permute.xlu1 %434 }
 0xa32   :  { %v437_v41 = vadd.f32 %v435_v40, %v427_v39 }
 0xa34   :  { %2008 = vtanh.f32 %v437_v41  ;;  %v501_v60 = vrot.slane %v437_v41, 6 }
 0xa3e   :  { %v2009_v11 = vpop.eup %2008 }
 0xa3f   :  { %440 = vrot.lane.b32.xlu0 %v2009_v11, %s2142_s26 }
 0xab1   :  { %v441_v42 = vpop.permute.xlu0 %440 }
 0xab2   :  { %v443_v43 = vmul.f32 %v2007_v35, %v441_v42 }
 0xab4   :  { %v444_v44 = vpack.c.bf16 %v443_v43, %v443_v43 }
 0xab6   :  { %v446_v45 = vrot.slane %v444_v44, 3  ;;  %v770_v46 = vsel %vm768_vm5, %v767_v23, %v444_v44 }
 0xab8   :  { %447 = vrot.lane.b32.xlu1 %v446_v45, %s2143_s3 }
 0xb2a   :  { %v448_v47 = vpop.permute.xlu1 %447 }
 0xb2b   :  { %1843 = vmatmul.mubr.msk.bf16.vlgmr.msra.gmra.mrb[8].mxu1 %vm139_vm3, %v448_v47 }
 0xb2c   :  { %1855 = vmatpush3.bf16.msra.mxu1 %v2239_v4  ;;  %1858 = vmatprep.mubr.msk.bf16.mxu1 %vm2140_vm0, %v2139_v1 }
 0xb2d   :  { %1856 = vmatprep.subr.bf16.mxu1 %v2139_v1 }
 0xb30   :  { %1857 = vmatpush3.bf16.msra.mxu1 %v2248_v6 }
 0xb31   :  { %1870 = vmatprep.subr.bf16.mxu1 %v2139_v1 }
 0xbfe   :  { %v486_v48 = vpop.f32.mrb[8].mxu1 }
 0xbff   :  { %v492_v49 = vadd.f32 %v486_v48, %v2272_v13  ;;  %v1844_v50 = vpop.f32.mrb[9].mxu1 }
 0xc00   :  { %v489_v51 = vpop.f32.mrb[10].mxu1 }
 0xc01   :  { %2010 = vtanh.f32 %v492_v49  ;;  %v1845_v52 = vpop.f32.mrb[11].mxu1  ;;  %v1701_v54 = vmul.f32 -1.442695, %v492_v49 }
 0xc03   :  { %2012 = vpow2.f32 %v1701_v54 }
 0xc0b   :  { %v2011_v53 = vpop.eup %2010 }
 0xc0c   :  { %505 = vrot.lane.b32.xlu0 %v2011_v53, %s2142_s26 }
 0xc0d   :  { %v2013_v55 = vpop.eup %2012 }
 0xc0e   :  { %v496_v56 = vadd.f32 1.0, %v2013_v55 }
 0xc10   :  { %2014 = vrcp.f32 %v496_v56 }
 0xc1a   :  { %v2015_v57 = vpop.eup %2014 }
 0xc1b   :  { %v503_v61 = vmul.f32 %v2015_v57, %v501_v60 }
 0xc7e   :  { %v506_v58 = vpop.permute.xlu0 %505 }
 0xc7f   :  { %v508_v59 = vmul.f32 %v2015_v57, %v506_v58 }
 0xc81   :  { %510 = vrot.lane.b32.xlu1 %v508_v59, %s2142_s26 }
 0xcf3   :  { %v511_v62 = vpop.permute.xlu1 %510 }
 0xcf4   :  { %v513_v63 = vadd.f32 %v511_v62, %v503_v61 }
 0xcf6   :  { %2016 = vtanh.f32 %v513_v63  ;;  %v579_v24 = vrot.slane %v513_v63, 6 }
 0xd00   :  { %v2017_v0 = vpop.eup %2016 }
 0xd01   :  { %516 = vrot.lane.b32.xlu0 %v2017_v0, %s2142_s26 }
 0xd73   :  { %v517_v2 = vpop.permute.xlu0 %516 }
 0xd74   :  { %v519_v3 = vmul.f32 %v2015_v57, %v517_v2 }
 0xd76   :  { %v520_v5 = vpack.c.bf16 %v519_v3, %v519_v3 }
 0xd78   :  { %v757_v8 = vrot.slane %v520_v5, 4  ;;  %522 = vrot.lane.b32.xlu1 %v520_v5, %s2143_s3 }
 0xd7a   :  { %v773_v9 = vsel %vm771_vm6, %v770_v46, %v757_v8 }
 0xdea   :  { %v523_v10 = vpop.permute.xlu1 %522 }
 0xdeb   :  { %1851 = vmatmul.mubr.msk.bf16.vlgmr.msra.gmra.mrb[12].mxu0 %vm139_vm3, %v523_v10 }
 0xdec   :  { %1863 = vmatpush3.bf16.msra.mxu0 %v2239_v4  ;;  %1866 = vmatprep.mubr.msk.bf16.mxu0 %vm2140_vm0, %v2139_v1 }
 0xded   :  { %1864 = vmatprep.subr.bf16.mxu0 %v2139_v1 }
 0xdf0   :  { %1865 = vmatpush3.bf16.msra.mxu0 %v2248_v6 }
 0xdf1   :  { %1878 = vmatprep.subr.bf16.mxu0 %v2139_v1 }
 0xebe   :  { %v561_v12 = vpop.f32.mrb[12].mxu0 }
 0xebf   :  { %v568_v14 = vrot.slane %v561_v12, 6  ;;  %v1852_v15 = vpop.f32.mrb[13].mxu0 }
 0xec0   :  { %v564_v16 = vpop.f32.mrb[14].mxu0 }
 0xec1   :  { %v570_v17 = vadd.f32 %v568_v14, %v2272_v13  ;;  %v1853_v18 = vpop.f32.mrb[15].mxu0 }
 0xec3   :  { %2018 = vtanh.f32 %v570_v17  ;;  %v1703_v4 = vmul.f32 -1.442695, %v570_v17 }
 0xec5   :  { %2020 = vpow2.f32 %v1703_v4  ;;  %v1973_v4 = vld [vmem:[%s2516_s4 + $0x8] sm:$0xff]  }
 0xecd   :  { %v2019_v19 = vpop.eup %2018 }
 0xece   :  { %583 = vrot.lane.b32.xlu0 %v2019_v19, %s2142_s26  ;;  %v2365_v19 = vld [vmem:[%s2517_s5] sm:$0xff]  }
 0xecf   :  { %v2021_v20 = vpop.eup %2020 }
 0xed0   :  { %v574_v21 = vadd.f32 1.0, %v2021_v20  ;;  %v2376_v20 = vld [vmem:[%s2517_s5 + $0x8] sm:$0xff]  }
 0xed2   :  { %2022 = vrcp.f32 %v574_v21 }
 0xedc   :  { %v2023_v22 = vpop.eup %2022 }
 0xedd   :  { %v581_v25 = vmul.f32 %v2023_v22, %v579_v24 }
 0xf40   :  { %v584_v6 = vpop.permute.xlu0 %583 }
 0xf41   :  { %v586_v23 = vmul.f32 %v2023_v22, %v584_v6 }
 0xf43   :  { %588 = vrot.lane.b32.xlu1 %v586_v23, %s2142_s26 }
 0xfb5   :  { %v589_v26 = vpop.permute.xlu1 %588 }
 0xfb6   :  { %v591_v27 = vadd.f32 %v589_v26, %v581_v25 }
 0xfb8   :  { %2024 = vtanh.f32 %v591_v27  ;;  %v658_v48 = vrot.slane %v591_v27, 6 }
 0xfc2   :  { %v2025_v28 = vpop.eup %2024 }
 0xfc3   :  { %594 = vrot.lane.b32.xlu0 %v2025_v28, %s2142_s26 }
0x1035   :  { %v595_v29 = vpop.permute.xlu0 %594 }
0x1036   :  { %v597_v30 = vmul.f32 %v2023_v22, %v595_v29 }
0x1038   :  { %v598_v31 = vpack.c.bf16 %v597_v30, %v597_v30  ;;  %v1708_v30 = vld [vmem:[%s2518_s6] ss:$0 sm:$0xff] }
0x103a   :  { %v600_v32 = vrot.slane %v598_v31, 1  ;;  %v758_v33 = vrot.slane %v598_v31, 4 }
0x103c   :  { %601 = vrot.lane.b32.xlu1 %v600_v32, %s2143_s3  ;;  %v776_v34 = vsel %vm774_vm7, %v773_v9, %v758_v33 }
0x10ae   :  { %v602_v35 = vpop.permute.xlu1 %601 }
0x10af   :  { %1859 = vmatmul.mubr.msk.bf16.vlgmr.msra.gmra.mrb[12].mxu1 %vm139_vm3, %v602_v35 }
0x10b0   :  { %1874 = vmatprep.mubr.msk.bf16.mxu1 %vm2140_vm0, %v2139_v1 }
0x1182   :  { %v640_v36 = vpop.f32.mrb[12].mxu1 }
0x1183   :  { %v647_v37 = vrot.slane %v640_v36, 4  ;;  %v1860_v38 = vpop.f32.mrb[13].mxu1 }
0x1184   :  { %v643_v39 = vpop.f32.mrb[14].mxu1 }
0x1185   :  { %v649_v40 = vadd.f32 %v647_v37, %v2272_v13  ;;  %v1861_v41 = vpop.f32.mrb[15].mxu1 }
0x1187   :  { %2026 = vtanh.f32 %v649_v40  ;;  %v1705_v42 = vmul.f32 -1.442695, %v649_v40 }
0x1189   :  { %2028 = vpow2.f32 %v1705_v42 }
0x1191   :  { %v2027_v11 = vpop.eup %2026 }
0x1192   :  { %662 = vrot.lane.b32.xlu0 %v2027_v11, %s2142_s26 }
0x1193   :  { %v2029_v43 = vpop.eup %2028 }
0x1194   :  { %v653_v44 = vadd.f32 1.0, %v2029_v43 }
0x1196   :  { %2030 = vrcp.f32 %v653_v44 }
0x11a0   :  { %v2031_v45 = vpop.eup %2030 }
0x11a1   :  { %v660_v49 = vmul.f32 %v2031_v45, %v658_v48 }
0x1204   :  { %v663_v46 = vpop.permute.xlu0 %662 }
0x1205   :  { %v665_v47 = vmul.f32 %v2031_v45, %v663_v46 }
0x1207   :  { %667 = vrot.lane.b32.xlu1 %v665_v47, %s2142_s26 }
0x1279   :  { %v668_v50 = vpop.permute.xlu1 %667 }
0x127a   :  { %v670_v51 = vadd.f32 %v668_v50, %v660_v49 }
0x127c   :  { %2032 = vtanh.f32 %v670_v51  ;;  %v737_v15 = vrot.slane %v670_v51, 6 }
0x1286   :  { %v2033_v52 = vpop.eup %2032 }
0x1287   :  { %673 = vrot.lane.b32.xlu0 %v2033_v52, %s2142_s26 }
0x12f9   :  { %v674_v53 = vpop.permute.xlu0 %673 }
0x12fa   :  { %v676_v54 = vmul.f32 %v2031_v45, %v674_v53 }
0x12fc   :  { %v677_v55 = vpack.c.bf16 %v676_v54, %v676_v54 }
0x12fe   :  { %v679_v56 = vrot.slane %v677_v55, 2  ;;  %v759_v57 = vrot.slane %v677_v55, 4 }
0x1300   :  { %680 = vrot.lane.b32.xlu1 %v679_v56, %s2143_s3  ;;  %v779_v58 = vsel %vm777_vm8, %v776_v34, %v759_v57 }
0x1372   :  { %v681_v59 = vpop.permute.xlu1 %680 }
0x1373   :  { %1867 = vmatmul.mubr.msk.bf16.vlgmr.msra.gmra.mrb[16].mxu0 %vm139_vm3, %v681_v59 }
0x1374   :  { %1882 = vmatprep.mubr.msk.bf16.mxu0 %vm2140_vm0, %v2139_v1  ;;  %1879 = vmatpush3.bf16.msra.mxu0 %v2365_v19 }
0x1375   :  { %1880 = vmatprep.subr.bf16.mxu0 %v2139_v1 }
0x1378   :  { %1881 = vmatpush3.bf16.msra.mxu0 %v2376_v20 }
0x1379   :  { %1894 = vmatprep.subr.bf16.mxu0 %v2139_v1 }
0x137b   :  { %1883 = vmatmul.mubr.bf16.vlgmr.msra.gmra.mrb[20].mxu0 %v2141_v7 }
0x137c   :  { %1895 = vmatpush3.bf16.msra.mxu0 %v2365_v19  ;;  %1898 = vmatprep.mubr.msk.bf16.mxu0 %vm2140_vm0, %v2139_v1 }
0x137d   :  { %1896 = vmatprep.subr.bf16.mxu0 %v2139_v1 }
0x1380   :  { %1897 = vmatpush3.bf16.msra.mxu0 %v2376_v20 }
0x1381   :  { %1910 = vmatprep.subr.bf16.mxu0 %v2139_v1 }
0x1446   :  { %v719_v60 = vpop.f32.mrb[16].mxu0 }
0x1447   :  { %v726_v61 = vrot.slane %v719_v60, 2  ;;  %v1868_v62 = vpop.f32.mrb[17].mxu0 }
0x1448   :  { %v722_v63 = vpop.f32.mrb[18].mxu0 }
0x1449   :  { %v728_v0 = vadd.f32 %v726_v61, %v2272_v13  ;;  %v1869_v2 = vpop.f32.mrb[19].mxu0  ;;  %v1971_v13 = vld [vmem:[%s2516_s4] sm:$0xff]  }
0x144a   :  { %1871 = vmatpush3.bf16.msra.mxu1 %v1971_v13 }
0x144b   :  { %2034 = vtanh.f32 %v728_v0  ;;  %v1707_v5 = vmul.f32 -1.442695, %v728_v0  ;;  %1872 = vmatprep.subr.bf16.mxu1 %v2139_v1 }
0x144d   :  { %2036 = vpow2.f32 %v1707_v5 }
0x144e   :  { %1873 = vmatpush3.bf16.msra.mxu1 %v1973_v4  ;;  %v903_v7 = vpop.f32.mrb[20].mxu0 }
0x144f   :  { %1886 = vmatprep.subr.bf16.mxu1 %v2139_v1  ;;  %v1884_v26 = vpop.f32.mrb[21].mxu0 }
0x1450   :  { %v906_v27 = vpop.f32.mrb[22].mxu0 }
0x1451   :  { %v1885_v28 = vpop.f32.mrb[23].mxu0 }
0x1455   :  { %v2035_v3 = vpop.eup %2034 }
0x1456   :  { %741 = vrot.lane.b32.xlu0 %v2035_v3, %s2142_s26 }
0x1457   :  { %v2037_v8 = vpop.eup %2036 }
0x1458   :  { %v732_v9 = vadd.f32 1.0, %v2037_v8 }
0x145a   :  { %2038 = vrcp.f32 %v732_v9 }
0x1464   :  { %v2039_v10 = vpop.eup %2038 }
0x1465   :  { %v739_v16 = vmul.f32 %v2039_v10, %v737_v15 }
0x14c8   :  { %v742_v12 = vpop.permute.xlu0 %741 }
0x14c9   :  { %v744_v14 = vmul.f32 %v2039_v10, %v742_v12 }
0x14cb   :  { %746 = vrot.lane.b32.xlu1 %v744_v14, %s2142_s26 }
0x153d   :  { %v747_v17 = vpop.permute.xlu1 %746 }
0x153e   :  { %v749_v18 = vadd.f32 %v747_v17, %v739_v16 }
0x1540   :  { %2040 = vtanh.f32 %v749_v18 }
0x154a   :  { %v2041_v21 = vpop.eup %2040 }
0x154b   :  { %752 = vrot.lane.b32.xlu0 %v2041_v21, %s2142_s26 }
0x15bd   :  { %v753_v22 = vpop.permute.xlu0 %752 }
0x15be   :  { %v755_v6 = vmul.f32 %v2039_v10, %v753_v22 }
0x15c0   :  { %v756_v23 = vpack.c.bf16 %v755_v6, %v755_v6 }
0x15c2   :  { %v761_v24 = vrot.slane %v756_v23, 4 }
0x15c4   :  { %v782_v25 = vsel %vm780_vm9, %v779_v58, %v761_v24 }
0x15c5   :  { %799 = vrot.lane.b32.xlu1 %v782_v25, %s2143_s3 }
0x1637   :  { %v800_v29 = vpop.permute.xlu1 %799 }
0x1638   :  { %1875 = vmatmul.mubr.msk.bf16.vlgmr.msra.gmra.mrb[16].mxu1 %vm139_vm3, %v800_v29 }
0x1639   :  { %1887 = vmatpush3.bf16.msra.mxu1 %v2365_v19  ;;  %1890 = vmatprep.mubr.msk.bf16.mxu1 %vm2140_vm0, %v2139_v1 }
0x163a   :  { %1888 = vmatprep.subr.bf16.mxu1 %v2139_v1 }
0x163d   :  { %1889 = vmatpush3.bf16.msra.mxu1 %v2376_v20 }
0x163e   :  { %1902 = vmatprep.subr.bf16.mxu1 %v2139_v1 }
0x170b   :  { %v850_v31 = vpop.f32.mrb[16].mxu1 }
0x170c   :  { %v2400_v32 = vadd.f32 %v1708_v30, %v850_v31  ;;  %v1876_v33 = vpop.f32.mrb[17].mxu1 }
0x170d   :  { %v853_v34 = vpop.f32.mrb[18].mxu1 }
0x170e   :  { %v909_v35 = vadd.f32 %v903_v7, %v2400_v32  ;;  %v2403_v36 = vadd.f32 %v1708_v30, %v853_v34  ;;  %v1877_v37 = vpop.f32.mrb[19].mxu1 }
0x1710   :  { %2042 = vtanh.f32 %v909_v35  ;;  %v1714_v39 = vmul.f32 -1.442695, %v909_v35 }
0x1712   :  { %2044 = vpow2.f32 %v1714_v39 }
0x171a   :  { %v2043_v38 = vpop.eup %2042 }
0x171b   :  { %919 = vrot.lane.b32.xlu0 %v2043_v38, %s2142_s26 }
0x171c   :  { %v2045_v40 = vpop.eup %2044 }
0x171d   :  { %v913_v41 = vadd.f32 1.0, %v2045_v40 }
0x171f   :  { %2046 = vrcp.f32 %v913_v41 }
0x1729   :  { %v2047_v11 = vpop.eup %2046 }
0x172a   :  { %v917_v44 = vmul.f32 0.0, %v2047_v11 }
0x178d   :  { %v920_v42 = vpop.permute.xlu0 %919 }
0x178e   :  { %v922_v43 = vmul.f32 %v2047_v11, %v920_v42 }
0x1790   :  { %924 = vrot.lane.b32.xlu1 %v922_v43, %s2142_s26 }
0x1802   :  { %v925_v45 = vpop.permute.xlu1 %924 }
0x1803   :  { %v927_v46 = vadd.f32 %v925_v45, %v917_v44 }
0x1805   :  { %2048 = vtanh.f32 %v927_v46  ;;  %v993_v2 = vrot.slane %v927_v46, 6 }
0x180f   :  { %v2049_v47 = vpop.eup %2048 }
0x1810   :  { %930 = vrot.lane.b32.xlu0 %v2049_v47, %s2142_s26 }
0x1882   :  { %v931_v48 = vpop.permute.xlu0 %930 }
0x1883   :  { %v933_v49 = vmul.f32 %v2047_v11, %v931_v48 }
0x1885   :  { %v934_v50 = vpack.c.bf16 %v933_v49, %v933_v49 }
0x1887   :  { %936 = vrot.lane.b32.xlu1 %v934_v50, %s2143_s3 }
0x18f9   :  { %v937_v51 = vpop.permute.xlu1 %936 }
0x18fa   :  { %1891 = vmatmul.mubr.msk.bf16.vlgmr.msra.gmra.mrb[20].mxu1 %vm139_vm3, %v937_v51 }
0x18fb   :  { %1903 = vmatpush3.bf16.msra.mxu1 %v2365_v19  ;;  %1906 = vmatprep.mubr.msk.bf16.mxu1 %vm2140_vm0, %v2139_v1 }
0x18fc   :  { %1904 = vmatprep.subr.bf16.mxu1 %v2139_v1 }
0x18ff   :  { %1905 = vmatpush3.bf16.msra.mxu1 %v2376_v20 }
0x1900   :  { %1918 = vmatprep.subr.bf16.mxu1 %v2139_v1 }
0x19cd   :  { %v975_v52 = vpop.f32.mrb[20].mxu1 }
0x19ce   :  { %v982_v53 = vrot.slane %v975_v52, 6  ;;  %v1892_v54 = vpop.f32.mrb[21].mxu1 }
0x19cf   :  { %v978_v55 = vpop.f32.mrb[22].mxu1 }
0x19d0   :  { %v984_v56 = vadd.f32 %v982_v53, %v2400_v32  ;;  %v1893_v57 = vpop.f32.mrb[23].mxu1 }
0x19d2   :  { %2050 = vtanh.f32 %v984_v56  ;;  %v1716_v59 = vmul.f32 -1.442695, %v984_v56 }
0x19d4   :  { %2052 = vpow2.f32 %v1716_v59 }
0x19dc   :  { %v2051_v58 = vpop.eup %2050 }
0x19dd   :  { %997 = vrot.lane.b32.xlu0 %v2051_v58, %s2142_s26 }
0x19de   :  { %v2053_v60 = vpop.eup %2052 }
0x19df   :  { %v988_v61 = vadd.f32 1.0, %v2053_v60 }
0x19e1   :  { %2054 = vrcp.f32 %v988_v61 }
0x19eb   :  { %v2055_v62 = vpop.eup %2054 }
0x19ec   :  { %v995_v3 = vmul.f32 %v2055_v62, %v993_v2 }
0x1a4f   :  { %v998_v63 = vpop.permute.xlu0 %997 }
0x1a50   :  { %v1000_v0 = vmul.f32 %v2055_v62, %v998_v63 }
0x1a52   :  { %1002 = vrot.lane.b32.xlu1 %v1000_v0, %s2142_s26 }
0x1ac4   :  { %v1003_v5 = vpop.permute.xlu1 %1002 }
0x1ac5   :  { %v1005_v8 = vadd.f32 %v1003_v5, %v995_v3 }
0x1ac7   :  { %2056 = vtanh.f32 %v1005_v8  ;;  %v1072_v28 = vrot.slane %v1005_v8, 6 }
0x1ad1   :  { %v2057_v9 = vpop.eup %2056 }
0x1ad2   :  { %1008 = vrot.lane.b32.xlu0 %v2057_v9, %s2142_s26 }
0x1b44   :  { %v1009_v10 = vpop.permute.xlu0 %1008 }
0x1b45   :  { %v1011_v12 = vmul.f32 %v2055_v62, %v1009_v10 }
0x1b47   :  { %v1012_v14 = vpack.c.bf16 %v1011_v12, %v1011_v12 }
0x1b49   :  { %v1014_v15 = vrot.slane %v1012_v14, 1 }
0x1b4b   :  { %1015 = vrot.lane.b32.xlu1 %v1014_v15, %s2143_s3 }
0x1bbd   :  { %v1016_v16 = vpop.permute.xlu1 %1015 }
0x1bbe   :  { %1899 = vmatmul.mubr.msk.bf16.vlgmr.msra.gmra.mrb[24].mxu0 %vm139_vm3, %v1016_v16 }
0x1bbf   :  { %1911 = vmatpush3.bf16.msra.mxu0 %v2365_v19  ;;  %1914 = vmatprep.mubr.msk.bf16.mxu0 %vm2140_vm0, %v2139_v1 }
0x1bc0   :  { %1912 = vmatprep.subr.bf16.mxu0 %v2139_v1 }
0x1bc3   :  { %1913 = vmatpush3.bf16.msra.mxu0 %v2376_v20 }
0x1bc4   :  { %1926 = vmatprep.subr.bf16.mxu0 %v2139_v1 }
0x1c91   :  { %v1054_v17 = vpop.f32.mrb[24].mxu0 }
0x1c92   :  { %v1061_v18 = vrot.slane %v1054_v17, 4  ;;  %v1900_v13 = vpop.f32.mrb[25].mxu0 }
0x1c93   :  { %v1057_v4 = vpop.f32.mrb[26].mxu0 }
0x1c94   :  { %v1063_v21 = vadd.f32 %v1061_v18, %v2400_v32  ;;  %v1901_v22 = vpop.f32.mrb[27].mxu0 }
0x1c96   :  { %2058 = vtanh.f32 %v1063_v21  ;;  %v1718_v23 = vmul.f32 -1.442695, %v1063_v21 }
0x1c98   :  { %2060 = vpow2.f32 %v1718_v23 }
0x1ca0   :  { %v2059_v6 = vpop.eup %2058 }
0x1ca1   :  { %1076 = vrot.lane.b32.xlu0 %v2059_v6, %s2142_s26 }
0x1ca2   :  { %v2061_v24 = vpop.eup %2060 }
0x1ca3   :  { %v1067_v25 = vadd.f32 1.0, %v2061_v24 }
0x1ca5   :  { %2062 = vrcp.f32 %v1067_v25 }
0x1caf   :  { %v2063_v7 = vpop.eup %2062 }
0x1cb0   :  { %v1074_v29 = vmul.f32 %v2063_v7, %v1072_v28 }
0x1d13   :  { %v1077_v26 = vpop.permute.xlu0 %1076 }
0x1d14   :  { %v1079_v27 = vmul.f32 %v2063_v7, %v1077_v26 }
0x1d16   :  { %1081 = vrot.lane.b32.xlu1 %v1079_v27, %s2142_s26 }
0x1d88   :  { %v1082_v30 = vpop.permute.xlu1 %1081 }
0x1d89   :  { %v1084_v31 = vadd.f32 %v1082_v30, %v1074_v29 }
0x1d8b   :  { %2064 = vtanh.f32 %v1084_v31  ;;  %v1151_v52 = vrot.slane %v1084_v31, 6 }
0x1d95   :  { %v2065_v33 = vpop.eup %2064 }
0x1d96   :  { %1087 = vrot.lane.b32.xlu0 %v2065_v33, %s2142_s26 }
0x1e08   :  { %v1088_v34 = vpop.permute.xlu0 %1087 }
0x1e09   :  { %v1090_v35 = vmul.f32 %v2063_v7, %v1088_v34 }
0x1e0b   :  { %v1091_v37 = vpack.c.bf16 %v1090_v35, %v1090_v35 }
0x1e0d   :  { %v1093_v38 = vrot.slane %v1091_v37, 2 }
0x1e0f   :  { %1094 = vrot.lane.b32.xlu1 %v1093_v38, %s2143_s3 }
0x1e81   :  { %v1095_v39 = vpop.permute.xlu1 %1094 }
0x1e82   :  { %1907 = vmatmul.mubr.msk.bf16.vlgmr.msra.gmra.mrb[24].mxu1 %vm139_vm3, %v1095_v39 }
0x1e83   :  { %1919 = vmatpush3.bf16.msra.mxu1 %v2365_v19  ;;  %1922 = vmatprep.mubr.msk.bf16.mxu1 %vm2140_vm0, %v2139_v1 }
0x1e84   :  { %1920 = vmatprep.subr.bf16.mxu1 %v2139_v1 }
0x1e87   :  { %1921 = vmatpush3.bf16.msra.mxu1 %v2376_v20 }
0x1e88   :  { %1934 = vmatprep.subr.bf16.mxu1 %v2139_v1 }
0x1f55   :  { %v1133_v40 = vpop.f32.mrb[24].mxu1 }
0x1f56   :  { %v1140_v41 = vrot.slane %v1133_v40, 2  ;;  %v1908_v11 = vpop.f32.mrb[25].mxu1 }
0x1f57   :  { %v1136_v42 = vpop.f32.mrb[26].mxu1 }
0x1f58   :  { %v1142_v43 = vadd.f32 %v1140_v41, %v2400_v32  ;;  %v1909_v44 = vpop.f32.mrb[27].mxu1 }
0x1f5a   :  { %2066 = vtanh.f32 %v1142_v43  ;;  %v1720_v46 = vmul.f32 -1.442695, %v1142_v43 }
0x1f5c   :  { %2068 = vpow2.f32 %v1720_v46 }
0x1f64   :  { %v2067_v45 = vpop.eup %2066 }
0x1f65   :  { %1155 = vrot.lane.b32.xlu0 %v2067_v45, %s2142_s26 }
0x1f66   :  { %v2069_v47 = vpop.eup %2068 }
0x1f67   :  { %v1146_v48 = vadd.f32 1.0, %v2069_v47 }
0x1f69   :  { %2070 = vrcp.f32 %v1146_v48 }
0x1f73   :  { %v2071_v49 = vpop.eup %2070 }
0x1f74   :  { %v1153_v53 = vmul.f32 %v2071_v49, %v1151_v52 }
0x1fd7   :  { %v1156_v50 = vpop.permute.xlu0 %1155 }
0x1fd8   :  { %v1158_v51 = vmul.f32 %v2071_v49, %v1156_v50 }
0x1fda   :  { %1160 = vrot.lane.b32.xlu1 %v1158_v51, %s2142_s26 }
0x204c   :  { %v1161_v54 = vpop.permute.xlu1 %1160 }
0x204d   :  { %v1163_v55 = vadd.f32 %v1161_v54, %v1153_v53 }
0x204f   :  { %2072 = vtanh.f32 %v1163_v55  ;;  %v1227_v15 = vrot.slane %v1163_v55, 6 }
0x2059   :  { %v2073_v32 = vpop.eup %2072 }
0x205a   :  { %1166 = vrot.lane.b32.xlu0 %v2073_v32, %s2142_s26 }
0x20cc   :  { %v1167_v56 = vpop.permute.xlu0 %1166 }
0x20cd   :  { %v1169_v57 = vmul.f32 %v2071_v49, %v1167_v56 }
0x20cf   :  { %v1170_v58 = vpack.c.bf16 %v1169_v57, %v1169_v57 }
0x20d1   :  { %v1172_v59 = vrot.slane %v1170_v58, 3 }
0x20d3   :  { %1173 = vrot.lane.b32.xlu1 %v1172_v59, %s2143_s3 }
0x2145   :  { %v1174_v60 = vpop.permute.xlu1 %1173 }
0x2146   :  { %1915 = vmatmul.mubr.msk.bf16.vlgmr.msra.gmra.mrb[28].mxu0 %vm139_vm3, %v1174_v60 }
0x2147   :  { %1927 = vmatpush3.bf16.msra.mxu0 %v2365_v19  ;;  %1930 = vmatprep.mubr.msk.bf16.mxu0 %vm2140_vm0, %v2139_v1 }
0x2148   :  { %1928 = vmatprep.subr.bf16.mxu0 %v2139_v1 }
0x214b   :  { %1929 = vmatpush3.bf16.msra.mxu0 %v2376_v20 }
0x214c   :  { %1942 = vmatprep.subr.bf16.mxu0 %v2139_v1 }
0x2219   :  { %v1212_v61 = vpop.f32.mrb[28].mxu0 }
0x221a   :  { %v1218_v62 = vadd.f32 %v1212_v61, %v2403_v36  ;;  %v1916_v63 = vpop.f32.mrb[29].mxu0 }
0x221b   :  { %v1215_v0 = vpop.f32.mrb[30].mxu0 }
0x221c   :  { %2074 = vtanh.f32 %v1218_v62  ;;  %v1917_v2 = vpop.f32.mrb[31].mxu0  ;;  %v1722_v5 = vmul.f32 -1.442695, %v1218_v62 }
0x221e   :  { %2076 = vpow2.f32 %v1722_v5 }
0x2226   :  { %v2075_v3 = vpop.eup %2074 }
0x2227   :  { %1231 = vrot.lane.b32.xlu0 %v2075_v3, %s2142_s26 }
0x2228   :  { %v2077_v8 = vpop.eup %2076 }
0x2229   :  { %v1222_v9 = vadd.f32 1.0, %v2077_v8 }
0x222b   :  { %2078 = vrcp.f32 %v1222_v9 }
0x2235   :  { %v2079_v10 = vpop.eup %2078 }
0x2236   :  { %v1229_v16 = vmul.f32 %v2079_v10, %v1227_v15 }
0x2299   :  { %v1232_v12 = vpop.permute.xlu0 %1231 }
0x229a   :  { %v1234_v14 = vmul.f32 %v2079_v10, %v1232_v12 }
0x229c   :  { %1236 = vrot.lane.b32.xlu1 %v1234_v14, %s2142_s26 }
0x230e   :  { %v1237_v17 = vpop.permute.xlu1 %1236 }
0x230f   :  { %v1239_v18 = vadd.f32 %v1237_v17, %v1229_v16 }
0x2311   :  { %2080 = vtanh.f32 %v1239_v18  ;;  %v1305_v34 = vrot.slane %v1239_v18, 6 }
0x231b   :  { %v2081_v13 = vpop.eup %2080 }
0x231c   :  { %1242 = vrot.lane.b32.xlu0 %v2081_v13, %s2142_s26 }
0x238e   :  { %v1243_v4 = vpop.permute.xlu0 %1242 }
0x238f   :  { %v1245_v21 = vmul.f32 %v2079_v10, %v1243_v4 }
0x2391   :  { %v1246_v22 = vpack.c.bf16 %v1245_v21, %v1245_v21 }
0x2393   :  { %1248 = vrot.lane.b32.xlu1 %v1246_v22, %s2143_s3 }
0x2405   :  { %v1249_v6 = vpop.permute.xlu1 %1248 }
0x2406   :  { %1923 = vmatmul.mubr.msk.bf16.vlgmr.msra.gmra.mrb[28].mxu1 %vm139_vm3, %v1249_v6 }
0x2407   :  { %1935 = vmatpush3.bf16.msra.mxu1 %v2365_v19  ;;  %1938 = vmatprep.mubr.msk.bf16.mxu1 %vm2140_vm0, %v2139_v1 }
0x2408   :  { %1936 = vmatprep.subr.bf16.mxu1 %v2139_v1 }
0x240b   :  { %1937 = vmatpush3.bf16.msra.mxu1 %v2376_v20 }
0x240c   :  { %1950 = vmatprep.subr.bf16.mxu1 %v2139_v1 }
0x24d9   :  { %v1287_v23 = vpop.f32.mrb[28].mxu1 }
0x24da   :  { %v1294_v24 = vrot.slane %v1287_v23, 6  ;;  %v1924_v25 = vpop.f32.mrb[29].mxu1 }
0x24db   :  { %v1290_v7 = vpop.f32.mrb[30].mxu1 }
0x24dc   :  { %v1296_v26 = vadd.f32 %v1294_v24, %v2403_v36  ;;  %v1925_v27 = vpop.f32.mrb[31].mxu1  ;;  %v1976_v24 = vld [vmem:[%s2519_s7 + $0x8] sm:$0xff]  }
0x24de   :  { %2082 = vtanh.f32 %v1296_v26  ;;  %v1724_v19 = vmul.f32 -1.442695, %v1296_v26 }
0x24e0   :  { %2084 = vpow2.f32 %v1724_v19 }
0x24e8   :  { %v2083_v28 = vpop.eup %2082 }
0x24e9   :  { %1309 = vrot.lane.b32.xlu0 %v2083_v28, %s2142_s26 }
0x24ea   :  { %v2085_v29 = vpop.eup %2084 }
0x24eb   :  { %v1300_v30 = vadd.f32 1.0, %v2085_v29  ;;  %v1977_v29 = vld [vmem:[%s2521_s9] sm:$0xff]  }
0x24ed   :  { %2086 = vrcp.f32 %v1300_v30  ;;  %v1729_v30 = vld [vmem:[%s2520_s8] ss:$0 sm:$0xff] }
0x24f7   :  { %v2087_v31 = vpop.eup %2086 }
0x24f8   :  { %v1307_v35 = vmul.f32 %v2087_v31, %v1305_v34 }
0x255b   :  { %v1310_v20 = vpop.permute.xlu0 %1309 }
0x255c   :  { %v1312_v33 = vmul.f32 %v2087_v31, %v1310_v20 }
0x255e   :  { %1314 = vrot.lane.b32.xlu1 %v1312_v33, %s2142_s26 }
0x25d0   :  { %v1315_v37 = vpop.permute.xlu1 %1314 }
0x25d1   :  { %v1317_v38 = vadd.f32 %v1315_v37, %v1307_v35 }
0x25d3   :  { %2088 = vtanh.f32 %v1317_v38  ;;  %v1384_v56 = vrot.slane %v1317_v38, 6 }
0x25dd   :  { %v2089_v39 = vpop.eup %2088 }
0x25de   :  { %1320 = vrot.lane.b32.xlu0 %v2089_v39, %s2142_s26 }
0x2650   :  { %v1321_v40 = vpop.permute.xlu0 %1320 }
0x2651   :  { %v1323_v41 = vmul.f32 %v2087_v31, %v1321_v40 }
0x2653   :  { %v1324_v11 = vpack.c.bf16 %v1323_v41, %v1323_v41  ;;  %v1625_v41 = vld [vmem:[%s2523_s11] sm:$0xf] }
0x2655   :  { %v1326_v42 = vrot.slane %v1324_v11, 1  ;;  %v1639_v11 = vsel %vm771_vm6, %v1625_v41, 0 }
0x2657   :  { %1327 = vrot.lane.b32.xlu1 %v1326_v42, %s2143_s3  ;;  %v1734_v42 = vld [vmem:[%s2522_s10] ss:$0 sm:$0xff] }
0x26c9   :  { %v1328_v43 = vpop.permute.xlu1 %1327 }
0x26ca   :  { %1931 = vmatmul.mubr.msk.bf16.vlgmr.msra.gmra.mrb[32].mxu0 %vm139_vm3, %v1328_v43 }
0x26cb   :  { %1946 = vmatprep.mubr.msk.bf16.mxu0 %vm2140_vm0, %v2139_v1 }
0x279d   :  { %v1366_v44 = vpop.f32.mrb[32].mxu0 }
0x279e   :  { %v1373_v45 = vrot.slane %v1366_v44, 4  ;;  %v1932_v46 = vpop.f32.mrb[33].mxu0 }
0x279f   :  { %v1369_v47 = vpop.f32.mrb[34].mxu0 }
0x27a0   :  { %v1375_v48 = vadd.f32 %v1373_v45, %v2403_v36  ;;  %v1933_v49 = vpop.f32.mrb[35].mxu0 }
0x27a2   :  { %2090 = vtanh.f32 %v1375_v48  ;;  %v1726_v51 = vmul.f32 -1.442695, %v1375_v48 }
0x27a4   :  { %2092 = vpow2.f32 %v1726_v51 }
0x27ac   :  { %v2091_v50 = vpop.eup %2090 }
0x27ad   :  { %1388 = vrot.lane.b32.xlu0 %v2091_v50, %s2142_s26 }
0x27ae   :  { %v2093_v52 = vpop.eup %2092 }
0x27af   :  { %v1379_v53 = vadd.f32 1.0, %v2093_v52 }
0x27b1   :  { %2094 = vrcp.f32 %v1379_v53  ;;  %v1738_v53 = vld [vmem:[#allocation2] ss:$0 sm:$0xff] }
0x27bb   :  { %v2095_v54 = vpop.eup %2094 }
0x27bc   :  { %v1386_v57 = vmul.f32 %v2095_v54, %v1384_v56 }
0x281f   :  { %v1389_v55 = vpop.permute.xlu0 %1388 }
0x2820   :  { %v1391_v32 = vmul.f32 %v2095_v54, %v1389_v55 }
0x2822   :  { %1393 = vrot.lane.b32.xlu1 %v1391_v32, %s2142_s26 }
0x2894   :  { %v1394_v58 = vpop.permute.xlu1 %1393 }
0x2895   :  { %v1396_v59 = vadd.f32 %v1394_v58, %v1386_v57 }
0x2897   :  { %2096 = vtanh.f32 %v1396_v59  ;;  %v1463_v21 = vrot.slane %v1396_v59, 6 }
0x28a1   :  { %v2097_v60 = vpop.eup %2096 }
0x28a2   :  { %1399 = vrot.lane.b32.xlu0 %v2097_v60, %s2142_s26 }
0x2914   :  { %v1400_v61 = vpop.permute.xlu0 %1399 }
0x2915   :  { %v1402_v62 = vmul.f32 %v2095_v54, %v1400_v61 }
0x2917   :  { %v1403_v63 = vpack.c.bf16 %v1402_v62, %v1402_v62 }
0x2919   :  { %v1405_v0 = vrot.slane %v1403_v63, 2 }
0x291b   :  { %1406 = vrot.lane.b32.xlu1 %v1405_v0, %s2143_s3 }
0x298d   :  { %v1407_v2 = vpop.permute.xlu1 %1406 }
0x298e   :  { %1939 = vmatmul.mubr.msk.bf16.vlgmr.msra.gmra.mrb[32].mxu1 %vm139_vm3, %v1407_v2 }
0x298f   :  { %1952 = vmatprep.mubr.msk.bf16.mxu1 %vm2140_vm0, %v2139_v1  ;;  %1951 = vmatpush3.bf16.msra.mxu1 %v1977_v29 }
0x2a61   :  { %v1445_v3 = vpop.f32.mrb[32].mxu1 }
0x2a62   :  { %v1452_v5 = vrot.slane %v1445_v3, 2  ;;  %v1940_v8 = vpop.f32.mrb[33].mxu1 }
0x2a63   :  { %v1448_v9 = vpop.f32.mrb[34].mxu1 }
0x2a64   :  { %v1454_v10 = vadd.f32 %v1452_v5, %v2403_v36  ;;  %v1941_v12 = vpop.f32.mrb[35].mxu1  ;;  %v1975_v36 = vld [vmem:[%s2519_s7] sm:$0xff]  }
0x2a65   :  { %1943 = vmatpush3.bf16.msra.mxu0 %v1975_v36 }
0x2a66   :  { %2098 = vtanh.f32 %v1454_v10  ;;  %v1728_v15 = vmul.f32 -1.442695, %v1454_v10  ;;  %1944 = vmatprep.subr.bf16.mxu0 %v2139_v1 }
0x2a68   :  { %2100 = vpow2.f32 %v1728_v15 }
0x2a69   :  { %1945 = vmatpush3.bf16.msra.mxu0 %v1976_v24 }
0x2a6a   :  { %1956 = vmatprep.subr.bf16.mxu0 %v2139_v1 }
0x2a70   :  { %v2099_v14 = vpop.eup %2098 }
0x2a71   :  { %1467 = vrot.lane.b32.xlu0 %v2099_v14, %s2142_s26 }
0x2a72   :  { %v2101_v16 = vpop.eup %2100 }
0x2a73   :  { %v1458_v17 = vadd.f32 1.0, %v2101_v16 }
0x2a75   :  { %2102 = vrcp.f32 %v1458_v17 }
0x2a7f   :  { %v2103_v18 = vpop.eup %2102 }
0x2a80   :  { %v1465_v22 = vmul.f32 %v2103_v18, %v1463_v21 }
0x2ae3   :  { %v1468_v13 = vpop.permute.xlu0 %1467 }
0x2ae4   :  { %v1470_v4 = vmul.f32 %v2103_v18, %v1468_v13 }
0x2ae6   :  { %1472 = vrot.lane.b32.xlu1 %v1470_v4, %s2142_s26 }
0x2b58   :  { %v1473_v6 = vpop.permute.xlu1 %1472 }
0x2b59   :  { %v1475_v23 = vadd.f32 %v1473_v6, %v1465_v22 }
0x2b5b   :  { %2104 = vtanh.f32 %v1475_v23 }
0x2b65   :  { %v2105_v25 = vpop.eup %2104 }
0x2b66   :  { %1478 = vrot.lane.b32.xlu0 %v2105_v25, %s2142_s26 }
0x2bd8   :  { %v1479_v7 = vpop.permute.xlu0 %1478 }
0x2bd9   :  { %v1481_v26 = vmul.f32 %v2103_v18, %v1479_v7 }
0x2bdb   :  { %v1487_v27 = vpack.c.bf16 %v1481_v26, %v1481_v26 }
0x2bdd   :  { %v1495_v28 = vrot.slane %v1487_v27, 3 }
0x2bdf   :  { %1496 = vrot.lane.b32.xlu1 %v1495_v28, %s2143_s3 }
0x2c51   :  { %v1497_v19 = vpop.permute.xlu1 %1496 }
0x2c52   :  { %1947 = vmatmul.mubr.msk.bf16.vlgmr.msra.gmra.mrb[36].mxu0 %vm139_vm3, %v1497_v19 }
0x2c53   :  { %1958 = vmatprep.mubr.msk.bf16.mxu0 %vm2140_vm0, %v2139_v1  ;;  %1957 = vmatpush3.bf16.msra.mxu0 %v1639_v11 }
0x2d25   :  { %v1547_v31 = vpop.f32.mrb[36].mxu0 }
0x2d26   :  { %v1548_v20 = vadd.f32 %v1729_v30, %v1547_v31  ;;  %v1948_v33 = vpop.f32.mrb[37].mxu0 }
0x2d27   :  { %v1550_v34 = vpop.f32.mrb[38].mxu0 }
0x2d28   :  { %v1733_v35 = vmul.f32 -1.442695, %v1548_v20  ;;  %v1949_v37 = vpop.f32.mrb[39].mxu0 }
0x2d2a   :  { %2106 = vpow2.f32 %v1733_v35 }
0x2d34   :  { %v2107_v38 = vpop.eup %2106 }
0x2d35   :  { %v1556_v39 = vadd.f32 1.0, %v2107_v38 }
0x2d37   :  { %2108 = vrcp.f32 %v1556_v39 }
0x2d41   :  { %v2109_v1 = vpop.eup %2108 }
0x2d42   :  { %v1562_v40 = vpack.c.bf16 %v2109_v1, %v2109_v1 }
0x2d44   :  { %1953 = vmatmul.mubr.msk.bf16.vlgmr.msra.gmra.mrb[36].mxu1 %vm1575_vm10, %v1562_v40 }
0x2e17   :  { %v1613_v43 = vpop.f32.mrb[36].mxu1 }
0x2e18   :  { %v1614_v44 = vadd.f32 %v1734_v42, %v1613_v43  ;;  %v1954_v45 = vpop.f32.mrb[37].mxu1 }
0x2e19   :  { %v1616_v46 = vpop.f32.mrb[38].mxu1 }
0x2e1a   :  { %v1737_v47 = vmul.f32 -1.442695, %v1614_v44  ;;  %v1955_v48 = vpop.f32.mrb[39].mxu1 }
0x2e1c   :  { %2110 = vpow2.f32 %v1737_v47 }
0x2e26   :  { %v2111_v49 = vpop.eup %2110 }
0x2e27   :  { %v1622_v50 = vadd.f32 1.0, %v2111_v49 }
0x2e29   :  { %2112 = vrcp.f32 %v1622_v50 }
0x2e33   :  { %v2113_v51 = vpop.eup %2112 }
0x2e34   :  { %v1627_v52 = vpack.c.bf16 %v2113_v51, %v2113_v51 }
0x2e36   :  { %1959 = vmatmul.mubr.msk.bf16.vlgmr.msra.gmra.mrb[40].mxu0 %vm1634_vm11, %v1627_v52 }
0x2f09   :  { %v1675_v54 = vpop.f32.mrb[40].mxu0 }
0x2f0a   :  { %v1676_v55 = vadd.f32 %v1738_v53, %v1675_v54  ;;  %v1960_v32 = vpop.f32.mrb[41].mxu0 }
0x2f0b   :  { %v1678_v56 = vpop.f32.mrb[42].mxu0 }
0x2f0c   :  { %1682 = vst.msk [vmem:[%s2525_s13] sm:$0x3] %vm1681_vm12, %v1676_v55  ;;  %v1961_v57 = vpop.f32.mrb[43].mxu0 }
0x2f0d   :  { %1687 = vsyncpa [#allocation4], 1 }

</bundles_post_ra>
